<compile_context>
chip_gen: v6e
topology: v6e:2x2x1
jax: 0.10.0
libtpu: 0.0.40
codegen_flags: <defaults>
</compile_context>

<pallas_src>
import jax
import jax.numpy as jnp
from jax.experimental import pallas as pl
from jax.experimental.pallas import tpu as pltpu

LAYERS = [4, 80, 80, 80, 80, 80, 80, 1]
TILE_N = 512                     # batch tile (lane axis); multiple of 128
COMPUTE_DTYPE = jnp.bfloat16     # MXU operand dtype; accumulation stays f32


def _mlp_kernel(x_ref, w0_ref, wr_ref, b_ref, out_ref):
    """Fused 7-layer MLP forward for one batch tile (feature-major layout).

    x_ref  : (4, TILE_N)    input features (f32), batch on the lane axis
    w0_ref : (80, 4)        first-layer weight, (out, in)
    wr_ref : (6, 80, 80)    layers 1..6 weights, (out, in); last layer zero-padded
    b_ref  : (7, 80, 1)     biases (zero-padded), f32
    out_ref: (1, TILE_N)    network output (lane-dense)
    """
    cdt = w0_ref.dtype
    # layer 0: (80, 4) @ (4, TILE_N) -> (80, TILE_N), f32 accumulate on the MXU
    h = jnp.dot(w0_ref[...], x_ref[...].astype(cdt),
                preferred_element_type=jnp.float32)
    h = jnp.tanh(h + b_ref[0])               # bias (80,1) broadcasts along lanes
    n_rest = wr_ref.shape[0]
    for li in range(n_rest):
        h = jnp.dot(wr_ref[li], h.astype(cdt),
                    preferred_element_type=jnp.float32) + b_ref[li + 1]
        if li != n_rest - 1:
            h = jnp.tanh(h)
    # last layer was zero-padded from (1, 80) to (80, 80): row 0 is the real output
    out_ref[...] = h[0:1, :].astype(out_ref.dtype)


def dnn2_forward(x, params, *, tile_n=TILE_N, compute_dtype=COMPUTE_DTYPE):
    """x: (N, 4) float32; params: list of (W (out,in), b (out,)) per layer (torch layout)."""
    N, in_dim = x.shape
    assert in_dim == LAYERS[0]
    hid = LAYERS[1]
    n_layers = len(LAYERS) - 1

    # --- pack parameters (feature-major, zero-padded to the 80-wide hidden size) ---
    w0 = params[0][0].astype(compute_dtype)                         # (80, 4)
    wr_list = []
    for li in range(1, n_layers):
        w = params[li][0]                                           # (out, in)
        if w.shape[0] < hid:
            w = jnp.pad(w, ((0, hid - w.shape[0]), (0, 0)))
        wr_list.append(w)
    wr = jnp.stack(wr_list).astype(compute_dtype)                   # (6, 80, 80)
    b_list = []
    for li in range(n_layers):
        b = params[li][1]                                           # (out,)
        if b.shape[0] < hid:
            b = jnp.pad(b, (0, hid - b.shape[0]))
        b_list.append(b)
    b_all = jnp.stack(b_list)[:, :, None].astype(jnp.float32)       # (7, 80, 1)

    # --- feature-major input: batch on the lane axis, padded to a tile multiple ---
    n_pad = pl.cdiv(N, tile_n) * tile_n
    x_t = jnp.pad(x.T.astype(jnp.float32), ((0, 0), (0, n_pad - N)))  # (4, n_pad)

    grid = (n_pad // tile_n,)

    flops = 2 * n_pad * (in_dim * hid + (n_layers - 1) * hid * hid)
    transcendentals = n_pad * hid * (n_layers - 1)
    bytes_accessed = (x_t.nbytes + n_pad * 4
                      + w0.nbytes + wr.nbytes + b_all.nbytes)

    out_t = pl.pallas_call(
        _mlp_kernel,
        out_shape=jax.ShapeDtypeStruct((1, n_pad), jnp.float32),
        grid_spec=pltpu.PrefetchScalarGridSpec(
            num_scalar_prefetch=0,
            grid=grid,
            in_specs=[
                pl.BlockSpec((in_dim, tile_n), lambda i: (0, i)),   # x tile (lane-dense)
                pl.BlockSpec(w0.shape, lambda i: (0, 0)),           # resident first-layer W
                pl.BlockSpec(wr.shape, lambda i: (0, 0, 0)),        # resident packed weights
                pl.BlockSpec(b_all.shape, lambda i: (0, 0, 0)),     # resident packed biases
            ],
            out_specs=pl.BlockSpec((1, tile_n), lambda i: (0, i)),  # lane-dense output
        ),
        compiler_params=pltpu.CompilerParams(
            dimension_semantics=("parallel",),
        ),
        cost_estimate=pl.CostEstimate(
            flops=flops,
            transcendentals=transcendentals,
            bytes_accessed=bytes_accessed,
        ),
    )(x_t, w0, wr, b_all)

    return out_t[:, :N].T                                           # (N, 1)


def init_params(key):
    """Deterministic init matching torch.nn.Linear default:
    weight (out,in), bias (out,), both U(-1/sqrt(fan_in), 1/sqrt(fan_in))."""
    params = []
    for i in range(len(LAYERS) - 1):
        fan_in, fan_out = LAYERS[i], LAYERS[i + 1]
        key, kw, kb = jax.random.split(key, 3)
        bound = 1.0 / jnp.sqrt(fan_in)
        w = jax.random.uniform(kw, (fan_out, fan_in), jnp.float32, -bound, bound)
        b = jax.random.uniform(kb, (fan_out,), jnp.float32, -bound, bound)
        params.append((w, b))
    return params


def reference_forward(x, params, compute_dtype=jnp.float32):
    """Plain-JAX reference. compute_dtype=COMPUTE_DTYPE replicates the kernel's
    bf16-operand / f32-accumulate math; jnp.float32 gives the exact torch semantics."""
    h = x
    for li, (w, b) in enumerate(params):
        h = jnp.dot(h.astype(compute_dtype), w.T.astype(compute_dtype),
                    preferred_element_type=jnp.float32) + b
        if li != len(params) - 1:
            h = jnp.tanh(h)
    return h


if __name__ == "__main__":
    key = jax.random.PRNGKey(0)
    key, kx = jax.random.split(key)

    N = 1024  # grid of 2 tiles at TILE_N=512 (keeps both v7x TensorCores busy)
    x = jax.random.uniform(kx, (N, LAYERS[0]), jnp.float32, -1.0, 1.0)
    params = init_params(key)

    out = dnn2_forward(x, params)
    out = jax.block_until_ready(out)
    assert out.shape == (N, 1)

    # precision-matched reference (same bf16 operands / f32 accumulation as the kernel)
    ref_matched = reference_forward(x, params, compute_dtype=COMPUTE_DTYPE)
    assert jnp.allclose(out, ref_matched, atol=1e-4, rtol=1e-4)

    # full-f32 reference (original module semantics) with bf16-appropriate tolerance
    ref_f32 = reference_forward(x, params, compute_dtype=jnp.float32)
    assert jnp.allclose(out, ref_f32, atol=2e-2, rtol=2e-2)

    print("KERNEL_OK")
</pallas_src>

<mosaic_0001>
module attributes {stable_mosaic.version = 11 : i64} {
  func.func @_mlp_kernel(%arg0: i32, %arg1: memref<4x512xf32, #tpu.memory_space<vmem>>, %arg2: memref<80x4xbf16, #tpu.memory_space<vmem>>, %arg3: memref<6x80x80xbf16, #tpu.memory_space<vmem>>, %arg4: memref<7x80x1xf32, #tpu.memory_space<vmem>>, %arg5: memref<1x512xf32, #tpu.memory_space<vmem>>) attributes {dimension_semantics = [#tpu.dimension_semantics<parallel>], iteration_bounds = array<i64: 2>, scalar_prefetch = 0 : i64, scratch_operands = 0 : i64, tpu.core_type = #tpu.core_type<tc>, window_params = [{transform_indices = @transform_0, window_bounds = array<i64: 4, 512>}, {pipeline_mode = #tpu.pipeline_mode<synchronous>, transform_indices = @transform_1, window_bounds = array<i64: 80, 4>}, {pipeline_mode = #tpu.pipeline_mode<synchronous>, transform_indices = @transform_2, window_bounds = array<i64: 6, 80, 80>}, {pipeline_mode = #tpu.pipeline_mode<synchronous>, transform_indices = @transform_3, window_bounds = array<i64: 7, 80, 1>}, {transform_indices = @transform_4, window_bounds = array<i64: 1, 512>}]} {
    %c0 = arith.constant 0 : index
    %c0_0 = arith.constant 0 : index
    %0 = vector.load %arg2[%c0, %c0_0] : memref<80x4xbf16, #tpu.memory_space<vmem>>, vector<80x4xbf16>
    %c0_1 = arith.constant 0 : index
    %c0_2 = arith.constant 0 : index
    %1 = vector.load %arg1[%c0_1, %c0_2] : memref<4x512xf32, #tpu.memory_space<vmem>>, vector<4x512xf32>
    %2 = arith.truncf %1 : vector<4x512xf32> to vector<4x512xbf16>
    %cst = arith.constant dense<0.000000e+00> : vector<80x512xf32>
    %3 = tpu.matmul %0, %2, %cst {dimension_numbers = #tpu.dot_dimension_numbers<[1], [0], [0], [1], [0, 0, 1, 1], [], []>} : vector<80x4xbf16>, vector<4x512xbf16>, vector<80x512xf32> -> vector<80x512xf32>
    %c0_3 = arith.constant 0 : index
    %c0_4 = arith.constant 0 : index
    %c0_5 = arith.constant 0 : index
    %4 = vector.load %arg4[%c0_3, %c0_4, %c0_5] : memref<7x80x1xf32, #tpu.memory_space<vmem>>, vector<1x80x1xf32>
    %5 = vector.shape_cast %4 : vector<1x80x1xf32> to vector<80x1xf32>
    %6 = vector.broadcast %5 : vector<80x1xf32> to vector<80x512xf32>
    %7 = arith.addf %3, %6 : vector<80x512xf32>
    %8 = math.tanh %7 : vector<80x512xf32>
    %c0_6 = arith.constant 0 : index
    %c0_7 = arith.constant 0 : index
    %c0_8 = arith.constant 0 : index
    %9 = vector.load %arg3[%c0_6, %c0_7, %c0_8] : memref<6x80x80xbf16, #tpu.memory_space<vmem>>, vector<1x80x80xbf16>
    %10 = vector.shape_cast %9 : vector<1x80x80xbf16> to vector<80x80xbf16>
    %11 = arith.truncf %8 : vector<80x512xf32> to vector<80x512xbf16>
    %cst_9 = arith.constant dense<0.000000e+00> : vector<80x512xf32>
    %12 = tpu.matmul %10, %11, %cst_9 {dimension_numbers = #tpu.dot_dimension_numbers<[1], [0], [0], [1], [0, 0, 1, 1], [], []>} : vector<80x80xbf16>, vector<80x512xbf16>, vector<80x512xf32> -> vector<80x512xf32>
    %c1 = arith.constant 1 : index
    %c0_10 = arith.constant 0 : index
    %c0_11 = arith.constant 0 : index
    %13 = vector.load %arg4[%c1, %c0_10, %c0_11] : memref<7x80x1xf32, #tpu.memory_space<vmem>>, vector<1x80x1xf32>
    %14 = vector.shape_cast %13 : vector<1x80x1xf32> to vector<80x1xf32>
    %15 = vector.broadcast %14 : vector<80x1xf32> to vector<80x512xf32>
    %16 = arith.addf %12, %15 : vector<80x512xf32>
    %17 = math.tanh %16 : vector<80x512xf32>
    %c1_12 = arith.constant 1 : index
    %c0_13 = arith.constant 0 : index
    %c0_14 = arith.constant 0 : index
    %18 = vector.load %arg3[%c1_12, %c0_13, %c0_14] : memref<6x80x80xbf16, #tpu.memory_space<vmem>>, vector<1x80x80xbf16>
    %19 = vector.shape_cast %18 : vector<1x80x80xbf16> to vector<80x80xbf16>
    %20 = arith.truncf %17 : vector<80x512xf32> to vector<80x512xbf16>
    %cst_15 = arith.constant dense<0.000000e+00> : vector<80x512xf32>
    %21 = tpu.matmul %19, %20, %cst_15 {dimension_numbers = #tpu.dot_dimension_numbers<[1], [0], [0], [1], [0, 0, 1, 1], [], []>} : vector<80x80xbf16>, vector<80x512xbf16>, vector<80x512xf32> -> vector<80x512xf32>
    %c2 = arith.constant 2 : index
    %c0_16 = arith.constant 0 : index
    %c0_17 = arith.constant 0 : index
    %22 = vector.load %arg4[%c2, %c0_16, %c0_17] : memref<7x80x1xf32, #tpu.memory_space<vmem>>, vector<1x80x1xf32>
    %23 = vector.shape_cast %22 : vector<1x80x1xf32> to vector<80x1xf32>
    %24 = vector.broadcast %23 : vector<80x1xf32> to vector<80x512xf32>
    %25 = arith.addf %21, %24 : vector<80x512xf32>
    %26 = math.tanh %25 : vector<80x512xf32>
    %c2_18 = arith.constant 2 : index
    %c0_19 = arith.constant 0 : index
    %c0_20 = arith.constant 0 : index
    %27 = vector.load %arg3[%c2_18, %c0_19, %c0_20] : memref<6x80x80xbf16, #tpu.memory_space<vmem>>, vector<1x80x80xbf16>
    %28 = vector.shape_cast %27 : vector<1x80x80xbf16> to vector<80x80xbf16>
    %29 = arith.truncf %26 : vector<80x512xf32> to vector<80x512xbf16>
    %cst_21 = arith.constant dense<0.000000e+00> : vector<80x512xf32>
    %30 = tpu.matmul %28, %29, %cst_21 {dimension_numbers = #tpu.dot_dimension_numbers<[1], [0], [0], [1], [0, 0, 1, 1], [], []>} : vector<80x80xbf16>, vector<80x512xbf16>, vector<80x512xf32> -> vector<80x512xf32>
    %c3 = arith.constant 3 : index
    %c0_22 = arith.constant 0 : index
    %c0_23 = arith.constant 0 : index
    %31 = vector.load %arg4[%c3, %c0_22, %c0_23] : memref<7x80x1xf32, #tpu.memory_space<vmem>>, vector<1x80x1xf32>
    %32 = vector.shape_cast %31 : vector<1x80x1xf32> to vector<80x1xf32>
    %33 = vector.broadcast %32 : vector<80x1xf32> to vector<80x512xf32>
    %34 = arith.addf %30, %33 : vector<80x512xf32>
    %35 = math.tanh %34 : vector<80x512xf32>
    %c3_24 = arith.constant 3 : index
    %c0_25 = arith.constant 0 : index
    %c0_26 = arith.constant 0 : index
    %36 = vector.load %arg3[%c3_24, %c0_25, %c0_26] : memref<6x80x80xbf16, #tpu.memory_space<vmem>>, vector<1x80x80xbf16>
    %37 = vector.shape_cast %36 : vector<1x80x80xbf16> to vector<80x80xbf16>
    %38 = arith.truncf %35 : vector<80x512xf32> to vector<80x512xbf16>
    %cst_27 = arith.constant dense<0.000000e+00> : vector<80x512xf32>
    %39 = tpu.matmul %37, %38, %cst_27 {dimension_numbers = #tpu.dot_dimension_numbers<[1], [0], [0], [1], [0, 0, 1, 1], [], []>} : vector<80x80xbf16>, vector<80x512xbf16>, vector<80x512xf32> -> vector<80x512xf32>
    %c4 = arith.constant 4 : index
    %c0_28 = arith.constant 0 : index
    %c0_29 = arith.constant 0 : index
    %40 = vector.load %arg4[%c4, %c0_28, %c0_29] : memref<7x80x1xf32, #tpu.memory_space<vmem>>, vector<1x80x1xf32>
    %41 = vector.shape_cast %40 : vector<1x80x1xf32> to vector<80x1xf32>
    %42 = vector.broadcast %41 : vector<80x1xf32> to vector<80x512xf32>
    %43 = arith.addf %39, %42 : vector<80x512xf32>
    %44 = math.tanh %43 : vector<80x512xf32>
    %c4_30 = arith.constant 4 : index
    %c0_31 = arith.constant 0 : index
    %c0_32 = arith.constant 0 : index
    %45 = vector.load %arg3[%c4_30, %c0_31, %c0_32] : memref<6x80x80xbf16, #tpu.memory_space<vmem>>, vector<1x80x80xbf16>
    %46 = vector.shape_cast %45 : vector<1x80x80xbf16> to vector<80x80xbf16>
    %47 = arith.truncf %44 : vector<80x512xf32> to vector<80x512xbf16>
    %cst_33 = arith.constant dense<0.000000e+00> : vector<80x512xf32>
    %48 = tpu.matmul %46, %47, %cst_33 {dimension_numbers = #tpu.dot_dimension_numbers<[1], [0], [0], [1], [0, 0, 1, 1], [], []>} : vector<80x80xbf16>, vector<80x512xbf16>, vector<80x512xf32> -> vector<80x512xf32>
    %c5 = arith.constant 5 : index
    %c0_34 = arith.constant 0 : index
    %c0_35 = arith.constant 0 : index
    %49 = vector.load %arg4[%c5, %c0_34, %c0_35] : memref<7x80x1xf32, #tpu.memory_space<vmem>>, vector<1x80x1xf32>
    %50 = vector.shape_cast %49 : vector<1x80x1xf32> to vector<80x1xf32>
    %51 = vector.broadcast %50 : vector<80x1xf32> to vector<80x512xf32>
    %52 = arith.addf %48, %51 : vector<80x512xf32>
    %53 = math.tanh %52 : vector<80x512xf32>
    %c5_36 = arith.constant 5 : index
    %c0_37 = arith.constant 0 : index
    %c0_38 = arith.constant 0 : index
    %54 = vector.load %arg3[%c5_36, %c0_37, %c0_38] : memref<6x80x80xbf16, #tpu.memory_space<vmem>>, vector<1x80x80xbf16>
    %55 = vector.shape_cast %54 : vector<1x80x80xbf16> to vector<80x80xbf16>
    %56 = arith.truncf %53 : vector<80x512xf32> to vector<80x512xbf16>
    %cst_39 = arith.constant dense<0.000000e+00> : vector<80x512xf32>
    %57 = tpu.matmul %55, %56, %cst_39 {dimension_numbers = #tpu.dot_dimension_numbers<[1], [0], [0], [1], [0, 0, 1, 1], [], []>} : vector<80x80xbf16>, vector<80x512xbf16>, vector<80x512xf32> -> vector<80x512xf32>
    %c6 = arith.constant 6 : index
    %c0_40 = arith.constant 0 : index
    %c0_41 = arith.constant 0 : index
    %58 = vector.load %arg4[%c6, %c0_40, %c0_41] : memref<7x80x1xf32, #tpu.memory_space<vmem>>, vector<1x80x1xf32>
    %59 = vector.shape_cast %58 : vector<1x80x1xf32> to vector<80x1xf32>
    %60 = vector.broadcast %59 : vector<80x1xf32> to vector<80x512xf32>
    %61 = arith.addf %57, %60 : vector<80x512xf32>
    %62 = vector.extract_strided_slice %61 {offsets = [0, 0], sizes = [1, 512], strides = [1, 1]} : vector<80x512xf32> to vector<1x512xf32>
    %c0_42 = arith.constant 0 : index
    %c0_43 = arith.constant 0 : index
    %63 = vector.load %arg5[%c0_42, %c0_43] : memref<1x512xf32, #tpu.memory_space<vmem>>, vector<1x512xf32>
    tpu.vector_store %arg5[%c0_42, %c0_43], %62 {strides = array<i32>} : memref<1x512xf32, #tpu.memory_space<vmem>>, vector<1x512xf32>,
    return
  }
  func.func @transform_0(%arg0: i32) -> (i32, i32) {
    %c0_i32 = arith.constant 0 : i32
    %c0_i32_0 = arith.constant 0 : i32
    return %c0_i32, %arg0 : i32, i32
  }
  func.func @transform_1(%arg0: i32) -> (i32, i32) {
    %c0_i32 = arith.constant 0 : i32
    %c0_i32_0 = arith.constant 0 : i32
    %c0_i32_1 = arith.constant 0 : i32
    return %c0_i32, %c0_i32_0 : i32, i32
  }
  func.func @transform_2(%arg0: i32) -> (i32, i32, i32) {
    %c0_i32 = arith.constant 0 : i32
    %c0_i32_0 = arith.constant 0 : i32
    %c0_i32_1 = arith.constant 0 : i32
    %c0_i32_2 = arith.constant 0 : i32
    return %c0_i32, %c0_i32_0, %c0_i32_1 : i32, i32, i32
  }
  func.func @transform_3(%arg0: i32) -> (i32, i32, i32) {
    %c0_i32 = arith.constant 0 : i32
    %c0_i32_0 = arith.constant 0 : i32
    %c0_i32_1 = arith.constant 0 : i32
    %c0_i32_2 = arith.constant 0 : i32
    return %c0_i32, %c0_i32_0, %c0_i32_1 : i32, i32, i32
  }
  func.func @transform_4(%arg0: i32) -> (i32, i32) {
    %c0_i32 = arith.constant 0 : i32
    %c0_i32_0 = arith.constant 0 : i32
    return %c0_i32, %arg0 : i32, i32
  }
}

</mosaic_0001>

<bundles_post_ra>
// kernel: tpu_custom_call.1
= control target key start
LH: loop header
LB: loop body
LE: loop exit
PB: predicated region body
PF: predicated region fallthrough
CT: control target
= control target key end

     0   :  { %9 = vsyncpa [#allocation3], 0  ;;  %s4797_s0 = inlined_call_operand.vmem [shape: f32[4,1024], index: 0, kind: input, shape index: {}]   ;;  %s4798_s1 = inlined_call_operand.vmem [shape: bf16[80,4], index: 1, kind: input, shape index: {}]   ;;  %s4799_s2 = inlined_call_operand.vmem [shape: bf16[6,80,80], index: 2, kind: input, shape index: {}]   ;;  %s4800_s3 = inlined_call_operand.vmem [shape: f32[7,80,1], index: 3, kind: input, shape index: {}]   ;;  %s4801_s4 = inlined_call_operand.hbm [shape: f32[1,1024], index: 4, kind: output, shape index: {}]  }
   0x1   :  { %11 = vsyncpa [#allocation3 + $0x1], 0  ;;  %s3473_s15 = smov 0   ;;  %s3475_s16 = smov 0  }
   0x2   :  { %s3477_s17 = smov 0   ;;  %s3479_s18 = smov 0  }
   0x3 LB: > { %s3494_s19 = sadd.s32 4294967295, %s3443_s18   ;;  %s2593_s20 = sadd.s32 4294967294, %s3443_s18   ;;  %s3443_s18 = sphi %s3479_s18, %s4807_s18   ;;  %s3439_s17 = sphi %s3477_s17, %s4806_s17   ;;  %s3435_s16 = sphi %s3475_s16, %s4805_s16   ;;  %s3431_s15 = sphi %s3473_s15, %s4804_s15  }
   0x4   : > { %s3498_s21 = sadd.s32 1, %s3443_s18   ;;  %s113_s22 = sadd.s32 1, %s3439_s17 }
   0x5   : > { %s110_s23 = ssub.s32 %s3443_s18, %s3498_s21  ;;  %p123_p0 = scmp.ne.s32.totalorder %s3439_s17, %s3435_s16 }
   0x6   : > { %p111_p1 = scmp.eq.s32.totalorder %s110_s23, 0  ;;  %p124_p2 = scmp.eq.s32.totalorder %s3494_s19, 1 }
   0x7   : > { %p129_p3 = scmp.ne.s32.totalorder %s3435_s16, %s3431_s15  ;;  %p130_p4 = scmp.eq.s32.totalorder %s2593_s20, 1 }
   0x8   : > { %s3509_s24 = scalar_select %p111_p1, %s3439_s17, %s113_s22  }
   0x9   : > { %p3511_p5 = por %p124_p2, %p123_p0  ;;  %p3515_p6 = por %p130_p4, %p129_p3 }
   0xa   : > { %p2596_p7 = scmp.ge.s32.totalorder %s3443_s18, 1  ;;  %p166_p8 = scmp.lt.s32.totalorder %s3443_s18, 3 }
   0xc   : > { %p167_p9 = pnand %p2596_p7, %p166_p8 }
   0xd   : > { %s2598_s5 = sshll.u32 (!%p167_p9), %s3494_s19, 2  ;;  %s189_s11 = sand.u32 (!%p167_p9), 1, %s3435_s16  }
   0xe   : > { %170 = sbr.rel (%p167_p9) target bundleno = 1887 (0x75f), region = 36  ;;  %p193_p10 = scmp.lt.s32.totalorder (!%p167_p9), %s2598_s5, 7 }
   0xf   : > { %s2597_s12 = sshll.u32 (!%p167_p9), %s189_s11, 2  ;;  %s2822_s13 = sshll.u32 (!%p167_p9), %s3494_s19, 6 }
  0x10   : > { %s191_s14 = scalar_lea.vmem (!%p167_p9), [#allocation2], %s2597_s12  ;;  %s4754_s27 = scalar_lea.hbm (!%p167_p9), %s4801_s4, %s2822_s13 }
  0x11   : > { %s2520_s19 = scalar_lea.sflag (!%p167_p9), [#allocation3], %s189_s11  ;;  %s3447_s29 = smov (!%p167_p9), [#allocation2]  }
  0x12   : > { %s3387_s30 = sshll.u32 (!%p167_p9), %s3447_s29, 4  ;;  %s3388_s30 = int_to_ptr.vmem [resolvable:$false] %s3387_s30 }
  0x13   : > { %v230_v0 = vld [vmem:[%s4800_s3 + $0x40] sm:$0xff]  ;;  %v228_v1 = vld [vmem:[%s4800_s3 + $0x30] sm:$0xff]  ;;  %v3445_v2 = vmov 0   ;;  %v231_v3 = vld [vmem:[%s4800_s3 + $0x48] sm:$0xff]  ;;  %s4809_s5 = smov (!%p193_p10, %s2598_s5), 7  ;;  %vm323_vm0 = vcmask 1041408  }
  0x14   : > { %2864 = vset.pattern.permute.xlu0 %v3445_v2  ;;  %2865 = vset.pattern.permute.xlu1 %v3445_v2  ;;  %v229_v4 = vld [vmem:[%s4800_s3 + $0x38] sm:$0xff]  ;;  %s2599_s10 = sshll.u32 %s4809_s5, 2  ;;  %v226_v5 = vld [vmem:[%s4800_s3 + $0x20] sm:$0xff]  ;;  %v227_v6 = vld [vmem:[%s4800_s3 + $0x28] sm:$0xff]  ;;  %vm307_vm1 = vcmask 31744   ;;  %vm658_vm2 = vcmask 654336  }
  0x15   : > { %274 = vperm.xlu0 %2864, %v230_v0   ;;  %264 = vperm.xlu1 %2865, %v228_v1   ;;  %s196_s20 = scalar_lea.vmem %s4797_s0, %s2599_s10  ;;  %v224_v17 = vld [vmem:[%s4800_s3 + $0x10] sm:$0xff]  ;;  %v225_v18 = vld [vmem:[%s4800_s3 + $0x18] sm:$0xff]  ;;  %v2868_v19 = vld [vmem:[%s4798_s1] sm:$0xff]   ;;  %s3389_s5 = scalar_lea.vmem %s3388_s30, 128 }
  0x16   : > { %368 = vmatprep.mubr.bf16.mxu0 %v3445_v2  ;;  %451 = vmatprep.mubr.bf16.mxu1 %v3445_v2  ;;  %v210_v7 = vld [vmem:[%s196_s20] sm:$0xff]  ;;  %v211_v8 = vld [vmem:[%s196_s20 + $0x8] sm:$0xff]  ;;  %v2625_v22 = vld [vmem:[%s4800_s3 + $0x90] sm:$0xff]  ;;  %s2534_s20 = sshll.u32 %s191_s14, 4  ;;  %s4756_s20 = int_to_ptr.vmem [resolvable:$true] %s2534_s20 }
  0x17   : > { %v214_v9 = vcombine.high %v210_v7, %v210_v7  ;;  %v215_v10 = vcombine.high %v211_v8, %v211_v8  ;;  %v218_v11 = vpack.c.bf16 %v210_v7, %v210_v7  ;;  %v220_v12 = vpack.c.bf16 %v211_v8, %v211_v8  ;;  %v222_v20 = vld [vmem:[%s4800_s3] sm:$0xff]  ;;  %v223_v21 = vld [vmem:[%s4800_s3 + $0x8] sm:$0xff]  ;;  %v2626_v23 = vld [vmem:[%s4800_s3 + $0x98] sm:$0xff]  ;;  %s3383_s28 = scalar_lea.vmem %s4756_s20, 64  ;;  %p3390_p0 = scmp.lt.s32.totalorder %s4756_s20, %s3388_s30 }
  0x18   : > { %v2869_v24 = vld [vmem:[%s4798_s1 + $0x8] sm:$0xff]   ;;  %v2623_v25 = vld [vmem:[%s4800_s3 + $0x80] sm:$0xff]  ;;  %v2621_v27 = vld [vmem:[%s4800_s3 + $0x70] sm:$0xff]  ;;  %p3384_p11 = scmp.ne.s32.totalorder %s4756_s20, %s3383_s28  ;;  %p3391_p1 = scmp.lt.s32.totalorder %s3389_s5, %s3383_s28 }
  0x19   : > { %279 = vperm.xlu0 %2864, %v231_v3   ;;  %269 = vperm.xlu1 %2865, %v229_v4   ;;  %v219_v13 = vpack.c.bf16 %v214_v9, %v214_v9  ;;  %v221_v14 = vpack.c.bf16 %v215_v10, %v215_v10  ;;  %v325_v15 = vsel %vm323_vm0, %v218_v11, 0  ;;  %v331_v16 = vsel %vm323_vm0, %v220_v12, 0  ;;  %v2624_v26 = vld [vmem:[%s4800_s3 + $0x88] sm:$0xff]  ;;  %v2870_v28 = vld [vmem:[%s4798_s1 + $0x10] sm:$0xff]   ;;  %v2622_v29 = vld [vmem:[%s4800_s3 + $0x78] sm:$0xff] }
  0x1a   : > { %v2619_v30 = vld [vmem:[%s4800_s3 + $0x60] sm:$0xff]  ;;  %v2620_v31 = vld [vmem:[%s4800_s3 + $0x68] sm:$0xff]  ;;  %v2617_v32 = vld [vmem:[%s4800_s3 + $0x50] sm:$0xff]  ;;  %p3385_p12 = pnand %p3384_p11, %p3511_p5  ;;  %p3392_p2 = por %p3391_p1, %p3390_p0 }
  0x1b   : > { %2605 = vmatprep.subr.msk.bf16.mxu0 %vm323_vm0, %v219_v13  ;;  %2611 = vmatprep.subr.msk.bf16.mxu1 %vm323_vm0, %v221_v14  ;;  %v2618_v33 = vld [vmem:[%s4800_s3 + $0x58] sm:$0xff]  ;;  %v2660_v35 = vld [vmem:[%s4800_s3 + $0xe0] sm:$0xff]  ;;  %v2661_v36 = vld [vmem:[%s4800_s3 + $0xe8] sm:$0xff] }
  0x1c   : > { %351 = vmatpush1.bf16.msra.mxu0 %v325_v15  ;;  %434 = vmatpush1.bf16.msra.mxu1 %v331_v16  ;;  %v2871_v34 = vld [vmem:[%s4798_s1 + $0x18] sm:$0xff]   ;;  %v2658_v37 = vld [vmem:[%s4800_s3 + $0xd0] sm:$0xff]  ;;  %v2872_v39 = vld [vmem:[%s4798_s1 + $0x20] sm:$0xff]   ;;  %p3386_p13 = pneg %p3385_p12 }
  0x1d   : > { %254 = vperm.xlu0 %2864, %v226_v5   ;;  %259 = vperm.xlu1 %2865, %v227_v6   ;;  %v2659_v38 = vld [vmem:[%s4800_s3 + $0xd8] sm:$0xff]  ;;  %v2656_v40 = vld [vmem:[%s4800_s3 + $0xc0] sm:$0xff]  ;;  %v2657_v41 = vld [vmem:[%s4800_s3 + $0xc8] sm:$0xff] }
  0x1e   : > { %v2654_v42 = vld [vmem:[%s4800_s3 + $0xb0] sm:$0xff]  ;;  %v2655_v43 = vld [vmem:[%s4800_s3 + $0xb8] sm:$0xff]  ;;  %v2652_v44 = vld [vmem:[%s4800_s3 + $0xa0] sm:$0xff]  ;;  %p3393_p3 = pnand %p3392_p2, %p3386_p13 }
  0x1f   : > { %2606 = vmatmul.mubr.msk.bf16.vlgmr.msra.gmra.mxu0 %vm307_vm1, %v2868_v19  ;;  %2612 = vmatmul.mubr.msk.bf16.vlgmr.msra.gmra.mxu1 %vm307_vm1, %v2868_v19  ;;  %v2653_v45 = vld [vmem:[%s4800_s3 + $0xa8] sm:$0xff]  ;;  %v2695_v46 = vld [vmem:[%s4800_s3 + $0x130] sm:$0xff]  ;;  %v2696_v47 = vld [vmem:[%s4800_s3 + $0x138] sm:$0xff] }
  0x20   : > { %378 = vmatprep.mubr.bf16.mxu0 %v3445_v2  ;;  %461 = vmatprep.mubr.bf16.mxu1 %v3445_v2  ;;  %v2693_v48 = vld [vmem:[%s4800_s3 + $0x120] sm:$0xff]  ;;  %v2694_v49 = vld [vmem:[%s4800_s3 + $0x128] sm:$0xff]  ;;  %v2691_v50 = vld [vmem:[%s4800_s3 + $0x110] sm:$0xff] }
  0x21   : > { %244 = vperm.xlu0 %2864, %v224_v17   ;;  %249 = vperm.xlu1 %2865, %v225_v18   ;;  %v2692_v51 = vld [vmem:[%s4800_s3 + $0x118] sm:$0xff]  ;;  %v2689_v52 = vld [vmem:[%s4800_s3 + $0x100] sm:$0xff]  ;;  %v2690_v53 = vld [vmem:[%s4800_s3 + $0x108] sm:$0xff] }
  0x22   : > { %v2687_v54 = vld [vmem:[%s4800_s3 + $0xf0] sm:$0xff]  ;;  %v2688_v55 = vld [vmem:[%s4800_s3 + $0xf8] sm:$0xff]  ;;  %v2730_v56 = vld [vmem:[%s4800_s3 + $0x180] sm:$0xff] }
  0x23   : > { %v2731_v57 = vld [vmem:[%s4800_s3 + $0x188] sm:$0xff]  ;;  %v2728_v58 = vld [vmem:[%s4800_s3 + $0x170] sm:$0xff]  ;;  %v2729_v59 = vld [vmem:[%s4800_s3 + $0x178] sm:$0xff] }
  0x24   : > { %v2726_v60 = vld [vmem:[%s4800_s3 + $0x160] sm:$0xff]  ;;  %v2727_v61 = vld [vmem:[%s4800_s3 + $0x168] sm:$0xff]  ;;  %v2724_v62 = vld [vmem:[%s4800_s3 + $0x150] sm:$0xff] }
  0x25   : > { %234 = vperm.xlu0 %2864, %v222_v20   ;;  %239 = vperm.xlu1 %2865, %v223_v21   ;;  %v2725_v63 = vld [vmem:[%s4800_s3 + $0x158] sm:$0xff]  ;;  %v2722_v0 = vld [vmem:[%s4800_s3 + $0x140] sm:$0xff]  ;;  %v2723_v1 = vld [vmem:[%s4800_s3 + $0x148] sm:$0xff] }
  0x26   : > { %v2765_v3 = vld [vmem:[%s4800_s3 + $0x1d0] sm:$0xff]  ;;  %v2766_v4 = vld [vmem:[%s4800_s3 + $0x1d8] sm:$0xff]  ;;  %v2763_v5 = vld [vmem:[%s4800_s3 + $0x1c0] sm:$0xff] }
  0x27   : > { %2607 = vmatmul.mubr.msk.bf16.gmra.mxu0 %vm307_vm1, %v2869_v24  ;;  %2613 = vmatmul.mubr.msk.bf16.gmra.mxu1 %vm307_vm1, %v2869_v24  ;;  %v2764_v6 = vld [vmem:[%s4800_s3 + $0x1c8] sm:$0xff]  ;;  %v2761_v7 = vld [vmem:[%s4800_s3 + $0x1b0] sm:$0xff]  ;;  %v2762_v8 = vld [vmem:[%s4800_s3 + $0x1b8] sm:$0xff] }
  0x28   : > { %388 = vmatprep.mubr.bf16.mxu0 %v3445_v2  ;;  %471 = vmatprep.mubr.bf16.mxu1 %v3445_v2  ;;  %v2759_v9 = vld [vmem:[%s4800_s3 + $0x1a0] sm:$0xff]  ;;  %v2760_v10 = vld [vmem:[%s4800_s3 + $0x1a8] sm:$0xff]  ;;  %v2757_v11 = vld [vmem:[%s4800_s3 + $0x190] sm:$0xff] }
  0x29   : > { %625 = vperm.xlu0 %2864, %v2625_v22   ;;  %630 = vperm.xlu1 %2865, %v2626_v23   ;;  %v2758_v12 = vld [vmem:[%s4800_s3 + $0x198] sm:$0xff]  ;;  %v2792_v13 = vld [vmem:[%s4800_s3 + $0x1e0] sm:$0xff] }
  0x2d   : > { %615 = vperm.xlu0 %2864, %v2623_v25   ;;  %620 = vperm.xlu1 %2865, %v2624_v26  }
  0x2f   : > { %2608 = vmatmul.mubr.msk.bf16.gmra.mxu0 %vm307_vm1, %v2870_v28  ;;  %2614 = vmatmul.mubr.msk.bf16.gmra.mxu1 %vm307_vm1, %v2870_v28 }
  0x30   : > { %398 = vmatprep.mubr.bf16.mxu0 %v3445_v2  ;;  %481 = vmatprep.mubr.bf16.mxu1 %v3445_v2 }
  0x31   : > { %605 = vperm.xlu0 %2864, %v2621_v27   ;;  %610 = vperm.xlu1 %2865, %v2622_v29  }
  0x35   : > { %595 = vperm.xlu0 %2864, %v2619_v30   ;;  %600 = vperm.xlu1 %2865, %v2620_v31  }
  0x37   : > { %2609 = vmatmul.mubr.msk.bf16.gmra.mxu0 %vm307_vm1, %v2871_v34  ;;  %2615 = vmatmul.mubr.msk.bf16.gmra.mxu1 %vm307_vm1, %v2871_v34 }
  0x38   : > { %408 = vmatprep.mubr.bf16.mxu0 %v3445_v2  ;;  %491 = vmatprep.mubr.bf16.mxu1 %v3445_v2 }
  0x39   : > { %585 = vperm.xlu0 %2864, %v2617_v32   ;;  %590 = vperm.xlu1 %2865, %v2618_v33  }
  0x3d   : > { %964 = vperm.xlu0 %2864, %v2660_v35   ;;  %969 = vperm.xlu1 %2865, %v2661_v36  }
  0x3f   : > { %2610 = vmatmul.mubr.msk.bf16.gmra.mxu0 %vm307_vm1, %v2872_v39  ;;  %2616 = vmatmul.mubr.msk.bf16.gmra.mxu1 %vm307_vm1, %v2872_v39 }
  0x40   : > { %706 = vmatprep.mubr.bf16.mxu0 %v3445_v2  ;;  %789 = vmatprep.mubr.bf16.mxu1 %v3445_v2 }
  0x41   : > { %954 = vperm.xlu0 %2864, %v2658_v37   ;;  %959 = vperm.xlu1 %2865, %v2659_v38  }
  0x45   : > { %944 = vperm.xlu0 %2864, %v2656_v40   ;;  %949 = vperm.xlu1 %2865, %v2657_v41  }
  0x49   : > { %934 = vperm.xlu0 %2864, %v2654_v42   ;;  %939 = vperm.xlu1 %2865, %v2655_v43  }
  0x4d   : > { %924 = vperm.xlu0 %2864, %v2652_v44   ;;  %929 = vperm.xlu1 %2865, %v2653_v45  }
  0x51   : > { %1302 = vperm.xlu0 %2864, %v2695_v46   ;;  %1307 = vperm.xlu1 %2865, %v2696_v47  }
  0x55   : > { %1292 = vperm.xlu0 %2864, %v2693_v48   ;;  %1297 = vperm.xlu1 %2865, %v2694_v49  }
  0x59   : > { %1282 = vperm.xlu0 %2864, %v2691_v50   ;;  %1287 = vperm.xlu1 %2865, %v2692_v51  }
  0x5d   : > { %1272 = vperm.xlu0 %2864, %v2689_v52   ;;  %1277 = vperm.xlu1 %2865, %v2690_v53  }
  0x61   : > { %1262 = vperm.xlu0 %2864, %v2687_v54   ;;  %1267 = vperm.xlu1 %2865, %v2688_v55  }
  0x65   : > { %1640 = vperm.xlu0 %2864, %v2730_v56   ;;  %1645 = vperm.xlu1 %2865, %v2731_v57  }
  0x69   : > { %1630 = vperm.xlu0 %2864, %v2728_v58   ;;  %1635 = vperm.xlu1 %2865, %v2729_v59  }
  0x6d   : > { %1620 = vperm.xlu0 %2864, %v2726_v60   ;;  %1625 = vperm.xlu1 %2865, %v2727_v61  }
  0x71   : > { %1610 = vperm.xlu0 %2864, %v2724_v62   ;;  %1615 = vperm.xlu1 %2865, %v2725_v63  }
  0x75   : > { %1600 = vperm.xlu0 %2864, %v2722_v0   ;;  %1605 = vperm.xlu1 %2865, %v2723_v1  }
  0x79   : > { %1978 = vperm.xlu0 %2864, %v2765_v3   ;;  %1983 = vperm.xlu1 %2865, %v2766_v4  }
  0x7d   : > { %1968 = vperm.xlu0 %2864, %v2763_v5   ;;  %1973 = vperm.xlu1 %2865, %v2764_v6  }
  0x81   : > { %1958 = vperm.xlu0 %2864, %v2761_v7   ;;  %1963 = vperm.xlu1 %2865, %v2762_v8  }
  0x85   : > { %1948 = vperm.xlu0 %2864, %v2759_v9   ;;  %1953 = vperm.xlu1 %2865, %v2760_v10  }
  0x89   : > { %1938 = vperm.xlu0 %2864, %v2757_v11   ;;  %1943 = vperm.xlu1 %2865, %v2758_v12  }
  0x8d   : > { %2276 = vperm.xlu0 %2864, %v2792_v13  }
  0x90   : > { %v3747_v14 = vpop.permute.xlu0 %274  ;;  %v3749_v15 = vpop.permute.xlu1 %264 }
  0x94   : > { %v3751_v16 = vpop.permute.xlu0 %279  ;;  %v3753_v17 = vpop.permute.xlu1 %269 }
  0x98   : > { %v3759_v22 = vpop.permute.xlu0 %254  ;;  %v3765_v25 = vpop.permute.xlu1 %259 }
  0x9c   : > { %v3771_v30 = vpop.permute.xlu0 %244  ;;  %v3773_v33 = vpop.permute.xlu1 %249 }
  0xa0   : > { %v3779_v38 = vpop.permute.xlu0 %234  ;;  %v3786_v42 = vpop.permute.xlu1 %239 }
  0xdf   : > { %v3755_v18 = vpop.f32.mrf.mxu0  ;;  %v3757_v19 = vpop.f32.mrf.mxu1 }
  0xe1   : > { %v372_v20 = vpop.f32.mrf.mxu0  ;;  %v455_v21 = vpop.f32.mrf.mxu1 }
  0xe2   : > { %v373_v39 = vadd.f32 %v372_v20, %v3779_v38  ;;  %v456_v43 = vadd.f32 %v455_v21, %v3779_v38 }
  0xe3   : > { %v3761_v23 = vpop.f32.mrf.mxu0  ;;  %v3763_v24 = vpop.f32.mrf.mxu1 }
  0xe4   : > { %2903 = vtanh.f32 %v373_v39 }
  0xe5   : > { %v376_v26 = vpop.f32.mrf.mxu0  ;;  %v459_v27 = vpop.f32.mrf.mxu1  ;;  %2905 = vtanh.f32 %v456_v43 }
  0xe6   : > { %v377_v44 = vadd.f32 %v376_v26, %v3786_v42  ;;  %v460_v47 = vadd.f32 %v459_v27, %v3786_v42 }
  0xe7   : > { %v3767_v28 = vpop.f32.mrf.mxu0  ;;  %v3769_v29 = vpop.f32.mrf.mxu1 }
  0xe8   : > { %2907 = vtanh.f32 %v377_v44 }
  0xe9   : > { %v382_v31 = vpop.f32.mrf.mxu0  ;;  %v465_v32 = vpop.f32.mrf.mxu1  ;;  %2909 = vtanh.f32 %v460_v47 }
  0xea   : > { %v383_v48 = vadd.f32 %v382_v31, %v3771_v30  ;;  %v466_v51 = vadd.f32 %v465_v32, %v3771_v30 }
  0xeb   : > { %v3775_v34 = vpop.f32.mrf.mxu0  ;;  %v3777_v35 = vpop.f32.mrf.mxu1 }
  0xec   : > { %2911 = vtanh.f32 %v383_v48 }
  0xed   : > { %v386_v36 = vpop.f32.mrf.mxu0  ;;  %v469_v37 = vpop.f32.mrf.mxu1  ;;  %2913 = vtanh.f32 %v466_v51 }
  0xee   : > { %v387_v52 = vadd.f32 %v386_v36, %v3773_v33  ;;  %v470_v55 = vadd.f32 %v469_v37, %v3773_v33 }
  0xef   : > { %v3782_v40 = vpop.f32.mrf.mxu0  ;;  %v3784_v41 = vpop.f32.mrf.mxu1 }
  0xf0   : > { %2915 = vtanh.f32 %v387_v52 }
  0xf1   : > { %v392_v45 = vpop.f32.mrf.mxu0  ;;  %v475_v46 = vpop.f32.mrf.mxu1  ;;  %2917 = vtanh.f32 %v470_v55 }
  0xf2   : > { %v393_v56 = vadd.f32 %v392_v45, %v3759_v22  ;;  %v476_v59 = vadd.f32 %v475_v46, %v3759_v22  ;;  %v3807_v11 = vpop.eup %2903 }
  0xf3   : > { %v3792_v49 = vpop.f32.mrf.mxu0  ;;  %v3794_v50 = vpop.f32.mrf.mxu1 }
  0xf4   : > { %2919 = vtanh.f32 %v393_v56  ;;  %v3810_v13 = vpop.eup %2905 }
  0xf5   : > { %v396_v53 = vpop.f32.mrf.mxu0  ;;  %v479_v54 = vpop.f32.mrf.mxu1  ;;  %2921 = vtanh.f32 %v476_v59 }
  0xf6   : > { %v397_v60 = vadd.f32 %v396_v53, %v3765_v25  ;;  %v480_v63 = vadd.f32 %v479_v54, %v3765_v25  ;;  %v3812_v26 = vpop.eup %2907 }
  0xf7   : > { %v400_v57 = vpop.f32.mrf.mxu0  ;;  %v483_v58 = vpop.f32.mrf.mxu1 }
  0xf8   : > { %2923 = vtanh.f32 %v397_v60  ;;  %v3816_v32 = vpop.eup %2909 }
  0xf9   : > { %v402_v61 = vpop.f32.mrf.mxu0  ;;  %v485_v62 = vpop.f32.mrf.mxu1  ;;  %2925 = vtanh.f32 %v480_v63  ;;  %v395_v63 = vadd.f32 %v3792_v49, %v3765_v25  ;;  %v385_v49 = vadd.f32 %v3775_v34, %v3773_v33  ;;  %v375_v34 = vadd.f32 %v3761_v23, %v3786_v42 }
  0xfa   : > { %v403_v0 = vadd.f32 %v402_v61, %v3749_v15  ;;  %v486_v4 = vadd.f32 %v485_v62, %v3749_v15  ;;  %v3818_v39 = vpop.eup %2911  ;;  %v401_v61 = vadd.f32 %v400_v57, %v3749_v15  ;;  %v484_v62 = vadd.f32 %v483_v58, %v3749_v15 }
  0xfb   : > { %v404_v1 = vpop.f32.mrf.mxu0  ;;  %v487_v3 = vpop.f32.mrf.mxu1  ;;  %v391_v57 = vadd.f32 %v3782_v40, %v3759_v22  ;;  %v474_v15 = vadd.f32 %v3784_v41, %v3759_v22  ;;  %v381_v40 = vadd.f32 %v3767_v28, %v3771_v30  ;;  %v464_v22 = vadd.f32 %v3769_v29, %v3771_v30 }
  0xfc   : > { %2927 = vtanh.f32 %v403_v0  ;;  %v3822_v45 = vpop.eup %2913  ;;  %v405_v55 = vadd.f32 %v404_v1, %v3753_v17  ;;  %v488_v59 = vadd.f32 %v487_v3, %v3753_v17  ;;  %v371_v28 = vadd.f32 %v3755_v18, %v3779_v38 }
  0xfd   : > { %v406_v5 = vpop.f32.mrf.mxu0  ;;  %v489_v6 = vpop.f32.mrf.mxu1  ;;  %2929 = vtanh.f32 %v486_v4  ;;  %v454_v29 = vadd.f32 %v3757_v19, %v3779_v38 }
  0xfe   : > { %v407_v7 = vadd.f32 %v406_v5, %v3753_v17  ;;  %v490_v8 = vadd.f32 %v489_v6, %v3753_v17  ;;  %v3824_v48 = vpop.eup %2915  ;;  %v478_v17 = vadd.f32 %v3794_v50, %v3765_v25  ;;  %v468_v25 = vadd.f32 %v3777_v35, %v3773_v33 }
  0xff   : > { %v410_v9 = vpop.f32.mrf.mxu0  ;;  %v493_v10 = vpop.f32.mrf.mxu1  ;;  %v458_v33 = vadd.f32 %v3763_v24, %v3786_v42 }
 0x100   : > { %v411_v12 = vadd.f32 %v410_v9, %v3747_v14  ;;  %2931 = vtanh.f32 %v407_v7  ;;  %v494_v51 = vadd.f32 %v493_v10, %v3747_v14  ;;  %v3829_v54 = vpop.eup %2917 }
 0x101   : > { %v412_v20 = vpop.f32.mrf.mxu0  ;;  %v495_v21 = vpop.f32.mrf.mxu1  ;;  %2933 = vtanh.f32 %v490_v8 }
 0x102   : > { %v413_v27 = vadd.f32 %v412_v20, %v3747_v14  ;;  %v496_v31 = vadd.f32 %v495_v21, %v3747_v14  ;;  %2935 = vtanh.f32 %v411_v12  ;;  %v3832_v56 = vpop.eup %2919 }
 0x103   : > { %v414_v36 = vpop.f32.mrf.mxu0  ;;  %v497_v37 = vpop.f32.mrf.mxu1 }
 0x104   : > { %2937 = vtanh.f32 %v413_v27  ;;  %v415_v43 = vadd.f32 %v414_v36, %v3751_v16  ;;  %v498_v44 = vadd.f32 %v497_v37, %v3751_v16  ;;  %v3835_v60 = vpop.eup %2921 }
 0x105   : > { %2939 = vtanh.f32 %v496_v31  ;;  %v416_v46 = vpop.f32.mrf.mxu0  ;;  %v499_v47 = vpop.f32.mrf.mxu1 }
 0x106   : > { %2941 = vtanh.f32 %v415_v43  ;;  %v417_v52 = vadd.f32 %v416_v46, %v3751_v16  ;;  %v500_v53 = vadd.f32 %v499_v47, %v3751_v16  ;;  %v3838_v14 = vpop.eup %2923 }
 0x107   : > { %2943 = vtanh.f32 %v498_v44  ;;  %v3841_v16 = vpop.eup %2925  ;;  %v561_v31 = vpack.c.bf16 %v3838_v14, %v3832_v56 }
 0x108   : > { %2945 = vtanh.f32 %v417_v52  ;;  %v563_v37 = vpack.c.bf16 %v3841_v16, %v3835_v60  ;;  %v557_v52 = vpack.c.bf16 %v3824_v48, %v3818_v39  ;;  %v555_v39 = vpack.c.bf16 %v3816_v32, %v3810_v13  ;;  %v2875_v13 = vld [vmem:[%s4799_s2 + $0x10] sm:$0xff]   ;;  %v2877_v32 = vld [vmem:[%s4799_s2 + $0x20] sm:$0xff]  }
 0x109   : > { %2947 = vtanh.f32 %v500_v53  ;;  %v2928_v0 = vpop.eup %2927 }
 0x10a   : > { %2949 = vtanh.f32 %v494_v51  ;;  %v2930_v1 = vpop.eup %2929 }
 0x10b   : > { %2951 = vtanh.f32 %v405_v55  ;;  %v559_v55 = vpack.c.bf16 %v3829_v54, %v3822_v45 }
 0x10c   : > { %2953 = vtanh.f32 %v488_v59 }
 0x10d   : > { %2955 = vtanh.f32 %v401_v61  ;;  %v2932_v3 = vpop.eup %2931 }
 0x10e   : > { %2957 = vtanh.f32 %v484_v62  ;;  %v2934_v58 = vpop.eup %2933  ;;  %v565_v42 = vpack.c.bf16 %v2932_v3, %v2928_v0  ;;  %v553_v62 = vpack.c.bf16 %v3812_v26, %v3807_v11  ;;  %v2873_v0 = vld [vmem:[%s4799_s2] sm:$0xff]   ;;  %v2874_v11 = vld [vmem:[%s4799_s2 + $0x8] sm:$0xff]   ;;  %v2876_v26 = vld [vmem:[%s4799_s2 + $0x18] sm:$0xff]  }
 0x10f   : > { %2959 = vtanh.f32 %v395_v63  ;;  %v2936_v4 = vpop.eup %2935  ;;  %v567_v18 = vpack.c.bf16 %v2934_v58, %v2930_v1  ;;  %v3916_v1 = vpop.permute.xlu1 %630 }
 0x110   : > { %2961 = vtanh.f32 %v478_v17  ;;  %v3914_v17 = vpop.permute.xlu0 %625 }
 0x111   : > { %v2938_v50 = vpop.eup %2937  ;;  %2963 = vtanh.f32 %v391_v57 }
 0x112   : > { %v2940_v5 = vpop.eup %2939  ;;  %2965 = vtanh.f32 %v474_v15 }
 0x113   : > { %v2942_v41 = vpop.eup %2941  ;;  %2967 = vtanh.f32 %v385_v49  ;;  %v3920_v3 = vpop.permute.xlu1 %620 }
 0x114   : > { %v2944_v6 = vpop.eup %2943  ;;  %2969 = vtanh.f32 %v468_v25  ;;  %v568_v9 = vpack.c.bf16 %v2942_v41, %v2936_v4  ;;  %v3918_v57 = vpop.permute.xlu0 %615 }
 0x115   : > { %v2946_v35 = vpop.eup %2945  ;;  %2971 = vtanh.f32 %v381_v40 }
 0x116   : > { %v2948_v7 = vpop.eup %2947  ;;  %2973 = vtanh.f32 %v464_v22  ;;  %v569_v30 = vpack.c.bf16 %v2946_v35, %v2938_v50 }
 0x117   : > { %v2950_v8 = vpop.eup %2949  ;;  %2975 = vtanh.f32 %v375_v34  ;;  %v571_v23 = vpack.c.bf16 %v2948_v7, %v2940_v5  ;;  %v3930_v40 = vpop.permute.xlu1 %610 }
 0x118   : > { %v2952_v10 = vpop.eup %2951  ;;  %2977 = vtanh.f32 %v458_v33  ;;  %680 = vmatprep.subr.bf16.mxu0 %v569_v30  ;;  %v570_v24 = vpack.c.bf16 %v2944_v6, %v2950_v8  ;;  %v3926_v4 = vpop.permute.xlu0 %605 }
 0x119   : > { %v2954_v12 = vpop.eup %2953  ;;  %2979 = vtanh.f32 %v371_v28  ;;  %763 = vmatprep.subr.bf16.mxu1 %v571_v23  ;;  %681 = vmatpush1.bf16.msra.mxu0 %v568_v9 }
 0x11a   : > { %v2956_v20 = vpop.eup %2955  ;;  %2981 = vtanh.f32 %v454_v29  ;;  %764 = vmatpush1.bf16.msra.mxu1 %v570_v24  ;;  %682 = vmatprep.subr.bf16.mxu0 %v565_v42 }
 0x11b   : > { %v2958_v19 = vpop.eup %2957  ;;  %765 = vmatprep.subr.bf16.mxu1 %v567_v18  ;;  %v564_v38 = vpack.c.bf16 %v2952_v10, %v2956_v20  ;;  %v3940_v28 = vpop.permute.xlu1 %600 }
 0x11c   : > { %v2960_v21 = vpop.eup %2959  ;;  %v566_v27 = vpack.c.bf16 %v2954_v12, %v2958_v19  ;;  %v3936_v6 = vpop.permute.xlu0 %595 }
 0x11d   : > { %v2962_v36 = vpop.eup %2961  ;;  %683 = vmatpush1.bf16.msra.mxu0 %v564_v38 }
 0x11e   : > { %v2964_v43 = vpop.eup %2963  ;;  %766 = vmatpush1.bf16.msra.mxu1 %v566_v27  ;;  %684 = vmatprep.subr.bf16.mxu0 %v561_v31 }
 0x11f   : > { %v2966_v44 = vpop.eup %2965  ;;  %767 = vmatprep.subr.bf16.mxu1 %v563_v37  ;;  %v560_v46 = vpack.c.bf16 %v2960_v21, %v2964_v43  ;;  %v3951_v42 = vpop.permute.xlu1 %590 }
 0x120   : > { %v2968_v47 = vpop.eup %2967  ;;  %v562_v51 = vpack.c.bf16 %v2962_v36, %v2966_v44  ;;  %v3946_v23 = vpop.permute.xlu0 %585 }
 0x121   : > { %v2970_v53 = vpop.eup %2969  ;;  %685 = vmatpush1.bf16.msra.mxu0 %v560_v46 }
 0x122   : > { %v2972_v56 = vpop.eup %2971  ;;  %768 = vmatpush1.bf16.msra.mxu1 %v562_v51  ;;  %686 = vmatprep.subr.bf16.mxu0 %v557_v52 }
 0x123   : > { %v2974_v59 = vpop.eup %2973  ;;  %769 = vmatprep.subr.bf16.mxu1 %v559_v55  ;;  %v556_v60 = vpack.c.bf16 %v2968_v47, %v2972_v56 }
 0x124   : > { %v2976_v61 = vpop.eup %2975  ;;  %v558_v14 = vpack.c.bf16 %v2970_v53, %v2974_v59 }
 0x125   : > { %v2978_v16 = vpop.eup %2977  ;;  %687 = vmatpush1.bf16.msra.mxu0 %v556_v60 }
 0x126   : > { %v2980_v48 = vpop.eup %2979  ;;  %770 = vmatpush1.bf16.msra.mxu1 %v558_v14  ;;  %688 = vmatprep.subr.bf16.mxu0 %v553_v62 }
 0x127   : > { %v2982_v45 = vpop.eup %2981  ;;  %771 = vmatprep.subr.bf16.mxu1 %v555_v39  ;;  %v552_v54 = vpack.c.bf16 %v2976_v61, %v2980_v48 }
 0x128   : > { %v554_v63 = vpack.c.bf16 %v2978_v16, %v2982_v45 }
 0x129   : > { %689 = vmatpush1.bf16.msra.mxu0 %v552_v54 }
 0x12a   : > { %772 = vmatpush1.bf16.msra.mxu1 %v554_v63 }
 0x12c   : > { %2632 = vmatmul.mubr.msk.bf16.vlgmr.msra.gmra.mxu0 %vm658_vm2, %v2873_v0 }
 0x12d   : > { %2637 = vmatmul.mubr.msk.bf16.vlgmr.msra.gmra.mxu1 %vm658_vm2, %v2873_v0  ;;  %716 = vmatprep.mubr.bf16.mxu0 %v3445_v2 }
 0x12e   : > { %799 = vmatprep.mubr.bf16.mxu1 %v3445_v2 }
 0x134   : > { %2633 = vmatmul.mubr.msk.bf16.gmra.mxu0 %vm658_vm2, %v2874_v11 }
 0x135   : > { %2638 = vmatmul.mubr.msk.bf16.gmra.mxu1 %vm658_vm2, %v2874_v11  ;;  %726 = vmatprep.mubr.bf16.mxu0 %v3445_v2 }
 0x136   : > { %809 = vmatprep.mubr.bf16.mxu1 %v3445_v2 }
 0x13c   : > { %2634 = vmatmul.mubr.msk.bf16.gmra.mxu0 %vm658_vm2, %v2875_v13 }
 0x13d   : > { %2639 = vmatmul.mubr.msk.bf16.gmra.mxu1 %vm658_vm2, %v2875_v13  ;;  %736 = vmatprep.mubr.bf16.mxu0 %v3445_v2 }
 0x13e   : > { %819 = vmatprep.mubr.bf16.mxu1 %v3445_v2 }
 0x144   : > { %2635 = vmatmul.mubr.msk.bf16.gmra.mxu0 %vm658_vm2, %v2876_v26 }
 0x145   : > { %2640 = vmatmul.mubr.msk.bf16.gmra.mxu1 %vm658_vm2, %v2876_v26  ;;  %746 = vmatprep.mubr.bf16.mxu0 %v3445_v2 }
 0x146   : > { %829 = vmatprep.mubr.bf16.mxu1 %v3445_v2 }
 0x14c   : > { %2636 = vmatmul.mubr.msk.bf16.gmra.mxu0 %vm658_vm2, %v2877_v32 }
 0x14d   : > { %2641 = vmatmul.mubr.msk.bf16.gmra.mxu1 %vm658_vm2, %v2877_v32  ;;  %1044 = vmatprep.mubr.bf16.mxu0 %v3445_v2 }
 0x14e   : > { %1127 = vmatprep.mubr.bf16.mxu1 %v3445_v2 }
 0x1ec   : > { %v3922_v15 = vpop.f32.mrf.mxu0 }
 0x1ed   : > { %v3924_v58 = vpop.f32.mrf.mxu1 }
 0x1ee   : > { %v710_v49 = vpop.f32.mrf.mxu0 }
 0x1ef   : > { %v793_v25 = vpop.f32.mrf.mxu1  ;;  %v711_v10 = vadd.f32 %v710_v49, %v3946_v23 }
 0x1f0   : > { %v3928_v50 = vpop.f32.mrf.mxu0  ;;  %v794_v12 = vadd.f32 %v793_v25, %v3946_v23 }
 0x1f1   : > { %v3932_v5 = vpop.f32.mrf.mxu1  ;;  %2983 = vtanh.f32 %v711_v10 }
 0x1f2   : > { %v714_v22 = vpop.f32.mrf.mxu0  ;;  %2985 = vtanh.f32 %v794_v12 }
 0x1f3   : > { %v797_v41 = vpop.f32.mrf.mxu1  ;;  %v715_v20 = vadd.f32 %v714_v22, %v3951_v42 }
 0x1f4   : > { %v3934_v34 = vpop.f32.mrf.mxu0  ;;  %v798_v38 = vadd.f32 %v797_v41, %v3951_v42 }
 0x1f5   : > { %v3938_v33 = vpop.f32.mrf.mxu1  ;;  %2987 = vtanh.f32 %v715_v20 }
 0x1f6   : > { %v720_v35 = vpop.f32.mrf.mxu0  ;;  %2989 = vtanh.f32 %v798_v38 }
 0x1f7   : > { %v803_v7 = vpop.f32.mrf.mxu1  ;;  %v721_v27 = vadd.f32 %v720_v35, %v3936_v6 }
 0x1f8   : > { %v3942_v29 = vpop.f32.mrf.mxu0  ;;  %v804_v36 = vadd.f32 %v803_v7, %v3936_v6 }
 0x1f9   : > { %v3944_v30 = vpop.f32.mrf.mxu1  ;;  %2991 = vtanh.f32 %v721_v27 }
 0x1fa   : > { %v724_v8 = vpop.f32.mrf.mxu0  ;;  %2993 = vtanh.f32 %v804_v36 }
 0x1fb   : > { %v807_v9 = vpop.f32.mrf.mxu1  ;;  %v725_v43 = vadd.f32 %v724_v8, %v3940_v28 }
 0x1fc   : > { %v3949_v24 = vpop.f32.mrf.mxu0  ;;  %v808_v46 = vadd.f32 %v807_v9, %v3940_v28 }
 0x1fd   : > { %v3954_v18 = vpop.f32.mrf.mxu1  ;;  %2995 = vtanh.f32 %v725_v43 }
 0x1fe   : > { %v730_v19 = vpop.f32.mrf.mxu0  ;;  %2997 = vtanh.f32 %v808_v46  ;;  %v3974_v11 = vpop.eup %2983 }
 0x1ff   : > { %v813_v21 = vpop.f32.mrf.mxu1  ;;  %v731_v51 = vadd.f32 %v730_v19, %v3926_v4  ;;  %v3977_v32 = vpop.eup %2985 }
 0x200   : > { %v3959_v31 = vpop.f32.mrf.mxu0  ;;  %v814_v53 = vadd.f32 %v813_v21, %v3926_v4 }
 0x201   : > { %v3962_v37 = vpop.f32.mrf.mxu1  ;;  %2999 = vtanh.f32 %v731_v51 }
 0x202   : > { %v734_v44 = vpop.f32.mrf.mxu0  ;;  %3001 = vtanh.f32 %v814_v53  ;;  %v3979_v25 = vpop.eup %2987 }
 0x203   : > { %v817_v47 = vpop.f32.mrf.mxu1  ;;  %v735_v56 = vadd.f32 %v734_v44, %v3930_v40  ;;  %v3982_v35 = vpop.eup %2989 }
 0x204   : > { %v738_v52 = vpop.f32.mrf.mxu0  ;;  %v818_v60 = vadd.f32 %v817_v47, %v3930_v40 }
 0x205   : > { %v821_v55 = vpop.f32.mrf.mxu1  ;;  %3003 = vtanh.f32 %v735_v56 }
 0x206   : > { %v740_v59 = vpop.f32.mrf.mxu0  ;;  %3005 = vtanh.f32 %v818_v60  ;;  %v3985_v9 = vpop.eup %2991  ;;  %v822_v60 = vadd.f32 %v821_v55, %v3918_v57 }
 0x207   : > { %v823_v61 = vpop.f32.mrf.mxu1  ;;  %v741_v14 = vadd.f32 %v740_v59, %v3918_v57  ;;  %v3988_v20 = vpop.eup %2993 }
 0x208   : > { %v742_v62 = vpop.f32.mrf.mxu0  ;;  %v824_v16 = vadd.f32 %v823_v61, %v3918_v57 }
 0x209   : > { %v825_v39 = vpop.f32.mrf.mxu1  ;;  %3007 = vtanh.f32 %v741_v14  ;;  %v743_v46 = vadd.f32 %v742_v62, %v3920_v3 }
 0x20a   : > { %v744_v48 = vpop.f32.mrf.mxu0  ;;  %3009 = vtanh.f32 %v824_v16  ;;  %v3991_v21 = vpop.eup %2995  ;;  %v826_v53 = vadd.f32 %v825_v39, %v3920_v3 }
 0x20b   : > { %v745_v45 = vadd.f32 %v744_v48, %v3920_v3  ;;  %v827_v54 = vpop.f32.mrf.mxu1  ;;  %v3995_v44 = vpop.eup %2997 }
 0x20c   : > { %v828_v63 = vadd.f32 %v827_v54, %v3920_v3  ;;  %v748_v0 = vpop.f32.mrf.mxu0  ;;  %v816_v3 = vadd.f32 %v3962_v37, %v3930_v40 }
 0x20d   : > { %v749_v13 = vadd.f32 %v748_v0, %v3914_v17  ;;  %v831_v26 = vpop.f32.mrf.mxu1  ;;  %3011 = vtanh.f32 %v745_v45 }
 0x20e   : > { %v750_v49 = vpop.f32.mrf.mxu0  ;;  %3013 = vtanh.f32 %v828_v63  ;;  %v832_v27 = vadd.f32 %v831_v26, %v3914_v17  ;;  %v3999_v51 = vpop.eup %2999 }
 0x20f   : > { %v751_v22 = vadd.f32 %v750_v49, %v3914_v17  ;;  %v833_v41 = vpop.f32.mrf.mxu1  ;;  %3015 = vtanh.f32 %v749_v13  ;;  %v4002_v56 = vpop.eup %3001 }
 0x210   : > { %v834_v7 = vadd.f32 %v833_v41, %v3914_v17  ;;  %v752_v8 = vpop.f32.mrf.mxu0  ;;  %v739_v17 = vadd.f32 %v738_v52, %v3918_v57  ;;  %v729_v52 = vadd.f32 %v3949_v24, %v3926_v4  ;;  %v812_v57 = vadd.f32 %v3954_v18, %v3926_v4 }
 0x211   : > { %3017 = vtanh.f32 %v751_v22  ;;  %v753_v10 = vadd.f32 %v752_v8, %v3916_v1  ;;  %v835_v12 = vpop.f32.mrf.mxu1  ;;  %v719_v24 = vadd.f32 %v3934_v34, %v3936_v6  ;;  %v802_v4 = vadd.f32 %v3938_v33, %v3936_v6 }
 0x212   : > { %3019 = vtanh.f32 %v834_v7  ;;  %v836_v19 = vadd.f32 %v835_v12, %v3916_v1  ;;  %v754_v38 = vpop.f32.mrf.mxu0  ;;  %v4005_v59 = vpop.eup %3003  ;;  %v709_v34 = vadd.f32 %v3922_v15, %v3946_v23  ;;  %v792_v6 = vadd.f32 %v3924_v58, %v3946_v23 }
 0x213   : > { %3021 = vtanh.f32 %v753_v10  ;;  %v755_v36 = vadd.f32 %v754_v38, %v3916_v1  ;;  %v837_v43 = vpop.f32.mrf.mxu1  ;;  %v4008_v61 = vpop.eup %3005  ;;  %v900_v7 = vpack.c.bf16 %v4005_v59, %v3999_v51 }
 0x214   : > { %3023 = vtanh.f32 %v836_v19  ;;  %v838_v47 = vadd.f32 %v837_v43, %v3916_v1  ;;  %v733_v1 = vadd.f32 %v3959_v31, %v3930_v40  ;;  %v723_v31 = vadd.f32 %v3942_v29, %v3940_v28 }
 0x215   : > { %3025 = vtanh.f32 %v755_v36  ;;  %v806_v40 = vadd.f32 %v3944_v30, %v3940_v28  ;;  %v713_v29 = vadd.f32 %v3928_v50, %v3951_v42  ;;  %v796_v28 = vadd.f32 %v3932_v5, %v3951_v42 }
 0x216   : > { %3027 = vtanh.f32 %v838_v47  ;;  %v3008_v14 = vpop.eup %3007  ;;  %v902_v10 = vpack.c.bf16 %v4008_v61, %v4002_v56  ;;  %v896_v43 = vpack.c.bf16 %v3991_v21, %v3985_v9  ;;  %v898_v47 = vpack.c.bf16 %v3995_v44, %v3988_v20 }
 0x217   : > { %3029 = vtanh.f32 %v832_v27  ;;  %v3010_v62 = vpop.eup %3009  ;;  %v894_v9 = vpack.c.bf16 %v3982_v35, %v3977_v32  ;;  %v2880_v32 = vld [vmem:[%s4799_s2 + $0x38] sm:$0xff]   ;;  %v2882_v35 = vld [vmem:[%s4799_s2 + $0x48] sm:$0xff]  }
 0x218   : > { %3031 = vtanh.f32 %v743_v46 }
 0x219   : > { %3033 = vtanh.f32 %v826_v53 }
 0x21a   : > { %3035 = vtanh.f32 %v739_v17  ;;  %v3012_v16 = vpop.eup %3011 }
 0x21b   : > { %3037 = vtanh.f32 %v822_v60  ;;  %v3014_v55 = vpop.eup %3013  ;;  %v904_v42 = vpack.c.bf16 %v3012_v16, %v3008_v14  ;;  %v892_v60 = vpack.c.bf16 %v3979_v25, %v3974_v11  ;;  %v2878_v14 = vld [vmem:[%s4799_s2 + $0x28] sm:$0xff]   ;;  %v2879_v11 = vld [vmem:[%s4799_s2 + $0x30] sm:$0xff]   ;;  %v2881_v25 = vld [vmem:[%s4799_s2 + $0x40] sm:$0xff]  }
 0x21c   : > { %3039 = vtanh.f32 %v733_v1  ;;  %v3016_v39 = vpop.eup %3015  ;;  %v906_v15 = vpack.c.bf16 %v3014_v55, %v3010_v62  ;;  %v4083_v62 = vpop.permute.xlu1 %969 }
 0x21d   : > { %3041 = vtanh.f32 %v816_v3  ;;  %v4081_v3 = vpop.permute.xlu0 %964 }
 0x21e   : > { %v3018_v37 = vpop.eup %3017  ;;  %3043 = vtanh.f32 %v729_v52 }
 0x21f   : > { %v3020_v48 = vpop.eup %3019  ;;  %3045 = vtanh.f32 %v812_v57 }
 0x220   : > { %v3022_v18 = vpop.eup %3021  ;;  %3047 = vtanh.f32 %v723_v31  ;;  %v4087_v16 = vpop.permute.xlu1 %959 }
 0x221   : > { %v3024_v45 = vpop.eup %3023  ;;  %3049 = vtanh.f32 %v806_v40  ;;  %v907_v0 = vpack.c.bf16 %v3022_v18, %v3016_v39  ;;  %v4085_v52 = vpop.permute.xlu0 %954 }
 0x222   : > { %v3026_v30 = vpop.eup %3025  ;;  %3051 = vtanh.f32 %v719_v24 }
 0x223   : > { %v3028_v54 = vpop.eup %3027  ;;  %3053 = vtanh.f32 %v802_v4  ;;  %v908_v33 = vpack.c.bf16 %v3026_v30, %v3018_v37 }
 0x224   : > { %v3030_v63 = vpop.eup %3029  ;;  %3055 = vtanh.f32 %v713_v29  ;;  %v910_v50 = vpack.c.bf16 %v3028_v54, %v3020_v48  ;;  %v4097_v24 = vpop.permute.xlu1 %949 }
 0x225   : > { %v3032_v13 = vpop.eup %3031  ;;  %3057 = vtanh.f32 %v796_v28  ;;  %1018 = vmatprep.subr.bf16.mxu0 %v908_v33  ;;  %v909_v5 = vpack.c.bf16 %v3024_v45, %v3030_v63  ;;  %v4093_v39 = vpop.permute.xlu0 %944 }
 0x226   : > { %v3034_v26 = vpop.eup %3033  ;;  %3059 = vtanh.f32 %v709_v34  ;;  %1101 = vmatprep.subr.bf16.mxu1 %v910_v50  ;;  %1019 = vmatpush1.bf16.msra.mxu0 %v907_v0 }
 0x227   : > { %v3036_v49 = vpop.eup %3035  ;;  %3061 = vtanh.f32 %v792_v6  ;;  %1102 = vmatpush1.bf16.msra.mxu1 %v909_v5  ;;  %1020 = vmatprep.subr.bf16.mxu0 %v904_v42 }
 0x228   : > { %v3038_v58 = vpop.eup %3037  ;;  %1103 = vmatprep.subr.bf16.mxu1 %v906_v15  ;;  %v903_v23 = vpack.c.bf16 %v3032_v13, %v3036_v49  ;;  %v4107_v34 = vpop.permute.xlu1 %939 }
 0x229   : > { %v3040_v22 = vpop.eup %3039  ;;  %v905_v41 = vpack.c.bf16 %v3034_v26, %v3038_v58  ;;  %v4103_v45 = vpop.permute.xlu0 %934 }
 0x22a   : > { %v3042_v8 = vpop.eup %3041  ;;  %1021 = vmatpush1.bf16.msra.mxu0 %v903_v23 }
 0x22b   : > { %v3044_v12 = vpop.eup %3043  ;;  %1104 = vmatpush1.bf16.msra.mxu1 %v905_v41  ;;  %1022 = vmatprep.subr.bf16.mxu0 %v900_v7 }
 0x22c   : > { %v3046_v19 = vpop.eup %3045  ;;  %1105 = vmatprep.subr.bf16.mxu1 %v902_v10  ;;  %v899_v38 = vpack.c.bf16 %v3040_v22, %v3044_v12  ;;  %v4118_v42 = vpop.permute.xlu1 %929 }
 0x22d   : > { %v3048_v27 = vpop.eup %3047  ;;  %v901_v36 = vpack.c.bf16 %v3042_v8, %v3046_v19  ;;  %v4113_v50 = vpop.permute.xlu0 %924 }
 0x22e   : > { %v3050_v46 = vpop.eup %3049  ;;  %1023 = vmatpush1.bf16.msra.mxu0 %v899_v38 }
 0x22f   : > { %v3052_v51 = vpop.eup %3051  ;;  %1106 = vmatpush1.bf16.msra.mxu1 %v901_v36  ;;  %1024 = vmatprep.subr.bf16.mxu0 %v896_v43 }
 0x230   : > { %v3054_v53 = vpop.eup %3053  ;;  %1107 = vmatprep.subr.bf16.mxu1 %v898_v47  ;;  %v895_v56 = vpack.c.bf16 %v3048_v27, %v3052_v51 }
 0x231   : > { %v3056_v17 = vpop.eup %3055  ;;  %v897_v59 = vpack.c.bf16 %v3050_v46, %v3054_v53 }
 0x232   : > { %v3058_v61 = vpop.eup %3057  ;;  %1025 = vmatpush1.bf16.msra.mxu0 %v895_v56 }
 0x233   : > { %v3060_v21 = vpop.eup %3059  ;;  %1108 = vmatpush1.bf16.msra.mxu1 %v897_v59  ;;  %1026 = vmatprep.subr.bf16.mxu0 %v892_v60 }
 0x234   : > { %v3062_v20 = vpop.eup %3061  ;;  %1109 = vmatprep.subr.bf16.mxu1 %v894_v9  ;;  %v891_v44 = vpack.c.bf16 %v3056_v17, %v3060_v21 }
 0x235   : > { %v893_v1 = vpack.c.bf16 %v3058_v61, %v3062_v20 }
 0x236   : > { %1027 = vmatpush1.bf16.msra.mxu0 %v891_v44 }
 0x237   : > { %1110 = vmatpush1.bf16.msra.mxu1 %v893_v1 }
 0x239   : > { %2667 = vmatmul.mubr.msk.bf16.vlgmr.msra.gmra.mxu0 %vm658_vm2, %v2878_v14 }
 0x23a   : > { %2672 = vmatmul.mubr.msk.bf16.vlgmr.msra.gmra.mxu1 %vm658_vm2, %v2878_v14  ;;  %1054 = vmatprep.mubr.bf16.mxu0 %v3445_v2 }
 0x23b   : > { %1137 = vmatprep.mubr.bf16.mxu1 %v3445_v2 }
 0x241   : > { %2668 = vmatmul.mubr.msk.bf16.gmra.mxu0 %vm658_vm2, %v2879_v11 }
 0x242   : > { %2673 = vmatmul.mubr.msk.bf16.gmra.mxu1 %vm658_vm2, %v2879_v11  ;;  %1064 = vmatprep.mubr.bf16.mxu0 %v3445_v2 }
 0x243   : > { %1147 = vmatprep.mubr.bf16.mxu1 %v3445_v2 }
 0x249   : > { %2669 = vmatmul.mubr.msk.bf16.gmra.mxu0 %vm658_vm2, %v2880_v32 }
 0x24a   : > { %2674 = vmatmul.mubr.msk.bf16.gmra.mxu1 %vm658_vm2, %v2880_v32  ;;  %1074 = vmatprep.mubr.bf16.mxu0 %v3445_v2 }
 0x24b   : > { %1157 = vmatprep.mubr.bf16.mxu1 %v3445_v2 }
 0x251   : > { %2670 = vmatmul.mubr.msk.bf16.gmra.mxu0 %vm658_vm2, %v2881_v25 }
 0x252   : > { %2675 = vmatmul.mubr.msk.bf16.gmra.mxu1 %vm658_vm2, %v2881_v25  ;;  %1084 = vmatprep.mubr.bf16.mxu0 %v3445_v2 }
 0x253   : > { %1167 = vmatprep.mubr.bf16.mxu1 %v3445_v2 }
 0x259   : > { %2671 = vmatmul.mubr.msk.bf16.gmra.mxu0 %vm658_vm2, %v2882_v35 }
 0x25a   : > { %2676 = vmatmul.mubr.msk.bf16.gmra.mxu1 %vm658_vm2, %v2882_v35  ;;  %1382 = vmatprep.mubr.bf16.mxu0 %v3445_v2 }
 0x25b   : > { %1465 = vmatprep.mubr.bf16.mxu1 %v3445_v2 }
 0x2f9   : > { %v4089_v57 = vpop.f32.mrf.mxu0 }
 0x2fa   : > { %v4091_v55 = vpop.f32.mrf.mxu1 }
 0x2fb   : > { %v1048_v31 = vpop.f32.mrf.mxu0 }
 0x2fc   : > { %v1131_v40 = vpop.f32.mrf.mxu1  ;;  %v1049_v13 = vadd.f32 %v1048_v31, %v4113_v50 }
 0x2fd   : > { %v4095_v37 = vpop.f32.mrf.mxu0  ;;  %v1132_v26 = vadd.f32 %v1131_v40, %v4113_v50 }
 0x2fe   : > { %v4099_v48 = vpop.f32.mrf.mxu1  ;;  %3063 = vtanh.f32 %v1049_v13 }
 0x2ff   : > { %v1052_v4 = vpop.f32.mrf.mxu0  ;;  %3065 = vtanh.f32 %v1132_v26 }
 0x300   : > { %v1135_v18 = vpop.f32.mrf.mxu1  ;;  %v1053_v49 = vadd.f32 %v1052_v4, %v4118_v42 }
 0x301   : > { %v4101_v29 = vpop.f32.mrf.mxu0  ;;  %v1136_v23 = vadd.f32 %v1135_v18, %v4118_v42 }
 0x302   : > { %v4105_v28 = vpop.f32.mrf.mxu1  ;;  %3067 = vtanh.f32 %v1053_v49 }
 0x303   : > { %v1058_v30 = vpop.f32.mrf.mxu0  ;;  %3069 = vtanh.f32 %v1136_v23 }
 0x304   : > { %v1141_v54 = vpop.f32.mrf.mxu1  ;;  %v1059_v41 = vadd.f32 %v1058_v30, %v4103_v45 }
 0x305   : > { %v4109_v6 = vpop.f32.mrf.mxu0  ;;  %v1142_v8 = vadd.f32 %v1141_v54, %v4103_v45 }
 0x306   : > { %v4111_v33 = vpop.f32.mrf.mxu1  ;;  %3071 = vtanh.f32 %v1059_v41 }
 0x307   : > { %v1062_v63 = vpop.f32.mrf.mxu0  ;;  %3073 = vtanh.f32 %v1142_v8 }
 0x308   : > { %v1145_v0 = vpop.f32.mrf.mxu1  ;;  %v1063_v12 = vadd.f32 %v1062_v63, %v4107_v34 }
 0x309   : > { %v4116_v5 = vpop.f32.mrf.mxu0  ;;  %v1146_v38 = vadd.f32 %v1145_v0, %v4107_v34 }
 0x30a   : > { %v4121_v15 = vpop.f32.mrf.mxu1  ;;  %3075 = vtanh.f32 %v1063_v12 }
 0x30b   : > { %v1068_v58 = vpop.f32.mrf.mxu0  ;;  %3077 = vtanh.f32 %v1146_v38  ;;  %v4141_v11 = vpop.eup %3063 }
 0x30c   : > { %v1151_v22 = vpop.f32.mrf.mxu1  ;;  %v1069_v36 = vadd.f32 %v1068_v58, %v4093_v39  ;;  %v4144_v35 = vpop.eup %3065 }
 0x30d   : > { %v4126_v7 = vpop.f32.mrf.mxu0  ;;  %v1152_v46 = vadd.f32 %v1151_v22, %v4093_v39 }
 0x30e   : > { %v4129_v10 = vpop.f32.mrf.mxu1  ;;  %3079 = vtanh.f32 %v1069_v36 }
 0x30f   : > { %v1072_v19 = vpop.f32.mrf.mxu0  ;;  %3081 = vtanh.f32 %v1152_v46  ;;  %v4146_v40 = vpop.eup %3067 }
 0x310   : > { %v1155_v27 = vpop.f32.mrf.mxu1  ;;  %v1073_v51 = vadd.f32 %v1072_v19, %v4097_v24  ;;  %v4149_v30 = vpop.eup %3069 }
 0x311   : > { %v1076_v43 = vpop.f32.mrf.mxu0  ;;  %v1156_v56 = vadd.f32 %v1155_v27, %v4097_v24 }
 0x312   : > { %v1159_v47 = vpop.f32.mrf.mxu1  ;;  %3083 = vtanh.f32 %v1073_v51 }
 0x313   : > { %v1078_v53 = vpop.f32.mrf.mxu0  ;;  %3085 = vtanh.f32 %v1156_v56  ;;  %v4152_v0 = vpop.eup %3071  ;;  %v1160_v56 = vadd.f32 %v1159_v47, %v4085_v52 }
 0x314   : > { %v1161_v17 = vpop.f32.mrf.mxu1  ;;  %v1079_v59 = vadd.f32 %v1078_v53, %v4085_v52  ;;  %v4155_v49 = vpop.eup %3073 }
 0x315   : > { %v1080_v60 = vpop.f32.mrf.mxu0  ;;  %v1162_v61 = vadd.f32 %v1161_v17, %v4085_v52 }
 0x316   : > { %v1163_v9 = vpop.f32.mrf.mxu1  ;;  %3087 = vtanh.f32 %v1079_v59  ;;  %v1081_v38 = vadd.f32 %v1080_v60, %v4087_v16 }
 0x317   : > { %v1082_v21 = vpop.f32.mrf.mxu0  ;;  %3089 = vtanh.f32 %v1162_v61  ;;  %v4158_v22 = vpop.eup %3075  ;;  %v1164_v46 = vadd.f32 %v1163_v9, %v4087_v16 }
 0x318   : > { %v1083_v20 = vadd.f32 %v1082_v21, %v4087_v16  ;;  %v1165_v44 = vpop.f32.mrf.mxu1  ;;  %v4162_v19 = vpop.eup %3077 }
 0x319   : > { %v1166_v1 = vadd.f32 %v1165_v44, %v4087_v16  ;;  %v1086_v14 = vpop.f32.mrf.mxu0  ;;  %v1154_v16 = vadd.f32 %v4129_v10, %v4097_v24 }
 0x31a   : > { %v1087_v32 = vadd.f32 %v1086_v14, %v4081_v3  ;;  %v1169_v25 = vpop.f32.mrf.mxu1  ;;  %3091 = vtanh.f32 %v1083_v20 }
 0x31b   : > { %v1088_v31 = vpop.f32.mrf.mxu0  ;;  %3093 = vtanh.f32 %v1166_v1  ;;  %v1170_v41 = vadd.f32 %v1169_v25, %v4081_v3  ;;  %v4166_v36 = vpop.eup %3079 }
 0x31c   : > { %v1089_v4 = vadd.f32 %v1088_v31, %v4081_v3  ;;  %v1171_v18 = vpop.f32.mrf.mxu1  ;;  %3095 = vtanh.f32 %v1087_v32  ;;  %v4169_v51 = vpop.eup %3081 }
 0x31d   : > { %v1172_v54 = vadd.f32 %v1171_v18, %v4081_v3  ;;  %v1090_v63 = vpop.f32.mrf.mxu0  ;;  %v1077_v3 = vadd.f32 %v1076_v43, %v4085_v52  ;;  %v1067_v43 = vadd.f32 %v4116_v5, %v4093_v39  ;;  %v1150_v52 = vadd.f32 %v4121_v15, %v4093_v39 }
 0x31e   : > { %3097 = vtanh.f32 %v1089_v4  ;;  %v1091_v13 = vadd.f32 %v1090_v63, %v4083_v62  ;;  %v1173_v26 = vpop.f32.mrf.mxu1  ;;  %v1057_v5 = vadd.f32 %v4101_v29, %v4103_v45  ;;  %v1140_v39 = vadd.f32 %v4105_v28, %v4103_v45 }
 0x31f   : > { %3099 = vtanh.f32 %v1172_v54  ;;  %v1174_v58 = vadd.f32 %v1173_v26, %v4083_v62  ;;  %v1092_v23 = vpop.f32.mrf.mxu0  ;;  %v4172_v53 = vpop.eup %3083  ;;  %v1047_v29 = vadd.f32 %v4089_v57, %v4113_v50  ;;  %v1130_v45 = vadd.f32 %v4091_v55, %v4113_v50 }
 0x320   : > { %3101 = vtanh.f32 %v1091_v13  ;;  %v1093_v8 = vadd.f32 %v1092_v23, %v4083_v62  ;;  %v1175_v12 = vpop.f32.mrf.mxu1  ;;  %v4175_v17 = vpop.eup %3085  ;;  %v1238_v54 = vpack.c.bf16 %v4172_v53, %v4166_v36 }
 0x321   : > { %3103 = vtanh.f32 %v1174_v58  ;;  %v1176_v27 = vadd.f32 %v1175_v12, %v4083_v62  ;;  %v1071_v62 = vadd.f32 %v4126_v7, %v4097_v24  ;;  %v1061_v7 = vadd.f32 %v4109_v6, %v4107_v34 }
 0x322   : > { %3105 = vtanh.f32 %v1093_v8  ;;  %v1144_v24 = vadd.f32 %v4111_v33, %v4107_v34  ;;  %v1051_v6 = vadd.f32 %v4095_v37, %v4118_v42  ;;  %v1134_v34 = vadd.f32 %v4099_v48, %v4118_v42 }
 0x323   : > { %3107 = vtanh.f32 %v1176_v27  ;;  %v3088_v59 = vpop.eup %3087  ;;  %v1240_v13 = vpack.c.bf16 %v4175_v17, %v4169_v51  ;;  %v1234_v12 = vpack.c.bf16 %v4158_v22, %v4152_v0  ;;  %v1236_v27 = vpack.c.bf16 %v4162_v19, %v4155_v49 }
 0x324   : > { %3109 = vtanh.f32 %v1170_v41  ;;  %v3090_v60 = vpop.eup %3089  ;;  %v1232_v0 = vpack.c.bf16 %v4149_v30, %v4144_v35  ;;  %v2885_v35 = vld [vmem:[%s4799_s2 + $0x60] sm:$0xff]   ;;  %v2887_v30 = vld [vmem:[%s4799_s2 + $0x70] sm:$0xff]  }
 0x325   : > { %3111 = vtanh.f32 %v1081_v38 }
 0x326   : > { %3113 = vtanh.f32 %v1164_v46 }
 0x327   : > { %3115 = vtanh.f32 %v1077_v3  ;;  %v3092_v61 = vpop.eup %3091 }
 0x328   : > { %3117 = vtanh.f32 %v1160_v56  ;;  %v3094_v47 = vpop.eup %3093  ;;  %v1242_v42 = vpack.c.bf16 %v3092_v61, %v3088_v59  ;;  %v1230_v56 = vpack.c.bf16 %v4146_v40, %v4141_v11  ;;  %v2883_v59 = vld [vmem:[%s4799_s2 + $0x50] sm:$0xff]   ;;  %v2884_v11 = vld [vmem:[%s4799_s2 + $0x58] sm:$0xff]   ;;  %v2886_v40 = vld [vmem:[%s4799_s2 + $0x68] sm:$0xff]  }
 0x329   : > { %3119 = vtanh.f32 %v1071_v62  ;;  %v3096_v9 = vpop.eup %3095  ;;  %v1244_v57 = vpack.c.bf16 %v3094_v47, %v3090_v60  ;;  %v4250_v60 = vpop.permute.xlu1 %1307 }
 0x32a   : > { %3121 = vtanh.f32 %v1154_v16  ;;  %v4248_v16 = vpop.permute.xlu0 %1302 }
 0x32b   : > { %v3098_v10 = vpop.eup %3097  ;;  %3123 = vtanh.f32 %v1067_v43 }
 0x32c   : > { %v3100_v21 = vpop.eup %3099  ;;  %3125 = vtanh.f32 %v1150_v52 }
 0x32d   : > { %v3102_v15 = vpop.eup %3101  ;;  %3127 = vtanh.f32 %v1061_v7  ;;  %v4254_v61 = vpop.permute.xlu1 %1297 }
 0x32e   : > { %v3104_v20 = vpop.eup %3103  ;;  %3129 = vtanh.f32 %v1144_v24  ;;  %v1245_v14 = vpack.c.bf16 %v3102_v15, %v3096_v9  ;;  %v4252_v43 = vpop.permute.xlu0 %1292 }
 0x32f   : > { %v3106_v33 = vpop.eup %3105  ;;  %3131 = vtanh.f32 %v1057_v5 }
 0x330   : > { %v3108_v44 = vpop.eup %3107  ;;  %3133 = vtanh.f32 %v1140_v39  ;;  %v1246_v28 = vpack.c.bf16 %v3106_v33, %v3098_v10 }
 0x331   : > { %v3110_v1 = vpop.eup %3109  ;;  %3135 = vtanh.f32 %v1051_v6  ;;  %v1248_v37 = vpack.c.bf16 %v3108_v44, %v3100_v21  ;;  %v4264_v5 = vpop.permute.xlu1 %1287 }
 0x332   : > { %v3112_v32 = vpop.eup %3111  ;;  %3137 = vtanh.f32 %v1134_v34  ;;  %1356 = vmatprep.subr.bf16.mxu0 %v1246_v28  ;;  %v1247_v48 = vpack.c.bf16 %v3104_v20, %v3110_v1  ;;  %v4260_v9 = vpop.permute.xlu0 %1282 }
 0x333   : > { %v3114_v25 = vpop.eup %3113  ;;  %3139 = vtanh.f32 %v1047_v29  ;;  %1439 = vmatprep.subr.bf16.mxu1 %v1248_v37  ;;  %1357 = vmatpush1.bf16.msra.mxu0 %v1245_v14 }
 0x334   : > { %v3116_v31 = vpop.eup %3115  ;;  %3141 = vtanh.f32 %v1130_v45  ;;  %1440 = vmatpush1.bf16.msra.mxu1 %v1247_v48  ;;  %1358 = vmatprep.subr.bf16.mxu0 %v1242_v42 }
 0x335   : > { %v3118_v55 = vpop.eup %3117  ;;  %1441 = vmatprep.subr.bf16.mxu1 %v1244_v57  ;;  %v1241_v50 = vpack.c.bf16 %v3112_v32, %v3116_v31  ;;  %v4274_v29 = vpop.permute.xlu1 %1277 }
 0x336   : > { %v3120_v4 = vpop.eup %3119  ;;  %v1243_v18 = vpack.c.bf16 %v3114_v25, %v3118_v55  ;;  %v4270_v20 = vpop.permute.xlu0 %1272 }
 0x337   : > { %v3122_v63 = vpop.eup %3121  ;;  %1359 = vmatpush1.bf16.msra.mxu0 %v1241_v50 }
 0x338   : > { %v3124_v26 = vpop.eup %3123  ;;  %1442 = vmatpush1.bf16.msra.mxu1 %v1243_v18  ;;  %1360 = vmatprep.subr.bf16.mxu0 %v1238_v54 }
 0x339   : > { %v3126_v58 = vpop.eup %3125  ;;  %1443 = vmatprep.subr.bf16.mxu1 %v1240_v13  ;;  %v1237_v23 = vpack.c.bf16 %v3120_v4, %v3124_v26  ;;  %v4285_v42 = vpop.permute.xlu1 %1267 }
 0x33a   : > { %v3128_v41 = vpop.eup %3127  ;;  %v1239_v8 = vpack.c.bf16 %v3122_v63, %v3126_v58  ;;  %v4280_v37 = vpop.permute.xlu0 %1262 }
 0x33b   : > { %v3130_v38 = vpop.eup %3129  ;;  %1361 = vmatpush1.bf16.msra.mxu0 %v1237_v23 }
 0x33c   : > { %v3132_v36 = vpop.eup %3131  ;;  %1444 = vmatpush1.bf16.msra.mxu1 %v1239_v8  ;;  %1362 = vmatprep.subr.bf16.mxu0 %v1234_v12 }
 0x33d   : > { %v3134_v46 = vpop.eup %3133  ;;  %1445 = vmatprep.subr.bf16.mxu1 %v1236_v27  ;;  %v1233_v51 = vpack.c.bf16 %v3128_v41, %v3132_v36 }
 0x33e   : > { %v3136_v3 = vpop.eup %3135  ;;  %v1235_v53 = vpack.c.bf16 %v3130_v38, %v3134_v46 }
 0x33f   : > { %v3138_v17 = vpop.eup %3137  ;;  %1363 = vmatpush1.bf16.msra.mxu0 %v1233_v51 }
 0x340   : > { %v3140_v22 = vpop.eup %3139  ;;  %1446 = vmatpush1.bf16.msra.mxu1 %v1235_v53  ;;  %1364 = vmatprep.subr.bf16.mxu0 %v1230_v56 }
 0x341   : > { %v3142_v49 = vpop.eup %3141  ;;  %1447 = vmatprep.subr.bf16.mxu1 %v1232_v0  ;;  %v1229_v19 = vpack.c.bf16 %v3136_v3, %v3140_v22 }
 0x342   : > { %v1231_v62 = vpack.c.bf16 %v3138_v17, %v3142_v49 }
 0x343   : > { %1365 = vmatpush1.bf16.msra.mxu0 %v1229_v19 }
 0x344   : > { %1448 = vmatpush1.bf16.msra.mxu1 %v1231_v62 }
 0x346   : > { %2702 = vmatmul.mubr.msk.bf16.vlgmr.msra.gmra.mxu0 %vm658_vm2, %v2883_v59 }
 0x347   : > { %2707 = vmatmul.mubr.msk.bf16.vlgmr.msra.gmra.mxu1 %vm658_vm2, %v2883_v59  ;;  %1392 = vmatprep.mubr.bf16.mxu0 %v3445_v2 }
 0x348   : > { %1475 = vmatprep.mubr.bf16.mxu1 %v3445_v2 }
 0x34e   : > { %2703 = vmatmul.mubr.msk.bf16.gmra.mxu0 %vm658_vm2, %v2884_v11 }
 0x34f   : > { %2708 = vmatmul.mubr.msk.bf16.gmra.mxu1 %vm658_vm2, %v2884_v11  ;;  %1402 = vmatprep.mubr.bf16.mxu0 %v3445_v2 }
 0x350   : > { %1485 = vmatprep.mubr.bf16.mxu1 %v3445_v2 }
 0x356   : > { %2704 = vmatmul.mubr.msk.bf16.gmra.mxu0 %vm658_vm2, %v2885_v35 }
 0x357   : > { %2709 = vmatmul.mubr.msk.bf16.gmra.mxu1 %vm658_vm2, %v2885_v35  ;;  %1412 = vmatprep.mubr.bf16.mxu0 %v3445_v2 }
 0x358   : > { %1495 = vmatprep.mubr.bf16.mxu1 %v3445_v2 }
 0x35e   : > { %2705 = vmatmul.mubr.msk.bf16.gmra.mxu0 %vm658_vm2, %v2886_v40 }
 0x35f   : > { %2710 = vmatmul.mubr.msk.bf16.gmra.mxu1 %vm658_vm2, %v2886_v40  ;;  %1422 = vmatprep.mubr.bf16.mxu0 %v3445_v2 }
 0x360   : > { %1505 = vmatprep.mubr.bf16.mxu1 %v3445_v2 }
 0x366   : > { %2706 = vmatmul.mubr.msk.bf16.gmra.mxu0 %vm658_vm2, %v2887_v30 }
 0x367   : > { %2711 = vmatmul.mubr.msk.bf16.gmra.mxu1 %vm658_vm2, %v2887_v30  ;;  %1720 = vmatprep.mubr.bf16.mxu0 %v3445_v2 }
 0x368   : > { %1803 = vmatprep.mubr.bf16.mxu1 %v3445_v2 }
 0x406   : > { %v4256_v52 = vpop.f32.mrf.mxu0 }
 0x407   : > { %v4258_v47 = vpop.f32.mrf.mxu1 }
 0x408   : > { %v1386_v7 = vpop.f32.mrf.mxu0 }
 0x409   : > { %v1469_v24 = vpop.f32.mrf.mxu1  ;;  %v1387_v32 = vadd.f32 %v1386_v7, %v4280_v37 }
 0x40a   : > { %v4262_v10 = vpop.f32.mrf.mxu0  ;;  %v1470_v25 = vadd.f32 %v1469_v24, %v4280_v37 }
 0x40b   : > { %v4266_v21 = vpop.f32.mrf.mxu1  ;;  %3143 = vtanh.f32 %v1387_v32 }
 0x40c   : > { %v1390_v39 = vpop.f32.mrf.mxu0  ;;  %3145 = vtanh.f32 %v1470_v25 }
 0x40d   : > { %v1473_v15 = vpop.f32.mrf.mxu1  ;;  %v1391_v31 = vadd.f32 %v1390_v39, %v4285_v42 }
 0x40e   : > { %v4268_v6 = vpop.f32.mrf.mxu0  ;;  %v1474_v50 = vadd.f32 %v1473_v15, %v4285_v42 }
 0x40f   : > { %v4272_v34 = vpop.f32.mrf.mxu1  ;;  %3147 = vtanh.f32 %v1391_v31 }
 0x410   : > { %v1396_v33 = vpop.f32.mrf.mxu0  ;;  %3149 = vtanh.f32 %v1474_v50 }
 0x411   : > { %v1479_v44 = vpop.f32.mrf.mxu1  ;;  %v1397_v18 = vadd.f32 %v1396_v33, %v4270_v20 }
 0x412   : > { %v4276_v45 = vpop.f32.mrf.mxu0  ;;  %v1480_v63 = vadd.f32 %v1479_v44, %v4270_v20 }
 0x413   : > { %v4278_v28 = vpop.f32.mrf.mxu1  ;;  %3151 = vtanh.f32 %v1397_v18 }
 0x414   : > { %v1400_v1 = vpop.f32.mrf.mxu0  ;;  %3153 = vtanh.f32 %v1480_v63 }
 0x415   : > { %v1483_v14 = vpop.f32.mrf.mxu1  ;;  %v1401_v26 = vadd.f32 %v1400_v1, %v4274_v29 }
 0x416   : > { %v4283_v48 = vpop.f32.mrf.mxu0  ;;  %v1484_v23 = vadd.f32 %v1483_v14, %v4274_v29 }
 0x417   : > { %v4288_v57 = vpop.f32.mrf.mxu1  ;;  %3155 = vtanh.f32 %v1401_v26 }
 0x418   : > { %v1406_v55 = vpop.f32.mrf.mxu0  ;;  %3157 = vtanh.f32 %v1484_v23  ;;  %v4308_v11 = vpop.eup %3143 }
 0x419   : > { %v1489_v4 = vpop.f32.mrf.mxu1  ;;  %v1407_v8 = vadd.f32 %v1406_v55, %v4260_v9  ;;  %v4311_v30 = vpop.eup %3145 }
 0x41a   : > { %v4293_v54 = vpop.f32.mrf.mxu0  ;;  %v1490_v38 = vadd.f32 %v1489_v4, %v4260_v9 }
 0x41b   : > { %v4296_v13 = vpop.f32.mrf.mxu1  ;;  %3159 = vtanh.f32 %v1407_v8 }
 0x41c   : > { %v1410_v58 = vpop.f32.mrf.mxu0  ;;  %3161 = vtanh.f32 %v1490_v38  ;;  %v4313_v24 = vpop.eup %3147 }
 0x41d   : > { %v1493_v41 = vpop.f32.mrf.mxu1  ;;  %v1411_v36 = vadd.f32 %v1410_v58, %v4264_v5  ;;  %v4316_v33 = vpop.eup %3149 }
 0x41e   : > { %v1414_v12 = vpop.f32.mrf.mxu0  ;;  %v1494_v51 = vadd.f32 %v1493_v41, %v4264_v5 }
 0x41f   : > { %v1497_v27 = vpop.f32.mrf.mxu1  ;;  %3163 = vtanh.f32 %v1411_v36 }
 0x420   : > { %v1416_v46 = vpop.f32.mrf.mxu0  ;;  %3165 = vtanh.f32 %v1494_v51  ;;  %v4319_v14 = vpop.eup %3151  ;;  %v1498_v51 = vadd.f32 %v1497_v27, %v4252_v43 }
 0x421   : > { %v1499_v3 = vpop.f32.mrf.mxu1  ;;  %v1417_v53 = vadd.f32 %v1416_v46, %v4252_v43  ;;  %v4322_v31 = vpop.eup %3153 }
 0x422   : > { %v1418_v56 = vpop.f32.mrf.mxu0  ;;  %v1500_v17 = vadd.f32 %v1499_v3, %v4252_v43 }
 0x423   : > { %v1501_v0 = vpop.f32.mrf.mxu1  ;;  %3167 = vtanh.f32 %v1417_v53  ;;  %v1419_v23 = vadd.f32 %v1418_v56, %v4254_v61 }
 0x424   : > { %v1420_v22 = vpop.f32.mrf.mxu0  ;;  %3169 = vtanh.f32 %v1500_v17  ;;  %v4325_v4 = vpop.eup %3155  ;;  %v1502_v38 = vadd.f32 %v1501_v0, %v4254_v61 }
 0x425   : > { %v1421_v49 = vadd.f32 %v1420_v22, %v4254_v61  ;;  %v1503_v19 = vpop.f32.mrf.mxu1  ;;  %v4329_v58 = vpop.eup %3157 }
 0x426   : > { %v1504_v62 = vadd.f32 %v1503_v19, %v4254_v61  ;;  %v1424_v59 = vpop.f32.mrf.mxu0  ;;  %v1492_v61 = vadd.f32 %v4296_v13, %v4264_v5 }
 0x427   : > { %v1425_v35 = vadd.f32 %v1424_v59, %v4248_v16  ;;  %v1507_v40 = vpop.f32.mrf.mxu1  ;;  %3171 = vtanh.f32 %v1421_v49 }
 0x428   : > { %v1426_v7 = vpop.f32.mrf.mxu0  ;;  %3173 = vtanh.f32 %v1504_v62  ;;  %v1508_v18 = vadd.f32 %v1507_v40, %v4248_v16  ;;  %v4333_v8 = vpop.eup %3159 }
 0x429   : > { %v1427_v39 = vadd.f32 %v1426_v7, %v4248_v16  ;;  %v1509_v15 = vpop.f32.mrf.mxu1  ;;  %3175 = vtanh.f32 %v1425_v35  ;;  %v4336_v36 = vpop.eup %3161 }
 0x42a   : > { %v1510_v44 = vadd.f32 %v1509_v15, %v4248_v16  ;;  %v1428_v1 = vpop.f32.mrf.mxu0  ;;  %v1415_v16 = vadd.f32 %v1414_v12, %v4252_v43  ;;  %v1405_v12 = vadd.f32 %v4283_v48, %v4260_v9  ;;  %v1488_v43 = vadd.f32 %v4288_v57, %v4260_v9 }
 0x42b   : > { %3177 = vtanh.f32 %v1427_v39  ;;  %v1429_v32 = vadd.f32 %v1428_v1, %v4250_v60  ;;  %v1511_v25 = vpop.f32.mrf.mxu1  ;;  %v1395_v48 = vadd.f32 %v4268_v6, %v4270_v20  ;;  %v1478_v9 = vadd.f32 %v4272_v34, %v4270_v20 }
 0x42c   : > { %3179 = vtanh.f32 %v1510_v44  ;;  %v1512_v55 = vadd.f32 %v1511_v25, %v4250_v60  ;;  %v1430_v50 = vpop.f32.mrf.mxu0  ;;  %v4339_v46 = vpop.eup %3163  ;;  %v1385_v6 = vadd.f32 %v4256_v52, %v4280_v37  ;;  %v1468_v20 = vadd.f32 %v4258_v47, %v4280_v37 }
 0x42d   : > { %3181 = vtanh.f32 %v1429_v32  ;;  %v1431_v63 = vadd.f32 %v1430_v50, %v4250_v60  ;;  %v1513_v26 = vpop.f32.mrf.mxu1  ;;  %v4342_v3 = vpop.eup %3165  ;;  %v1576_v44 = vpack.c.bf16 %v4339_v46, %v4333_v8 }
 0x42e   : > { %3183 = vtanh.f32 %v1512_v55  ;;  %v1514_v41 = vadd.f32 %v1513_v26, %v4250_v60  ;;  %v1409_v60 = vadd.f32 %v4293_v54, %v4264_v5  ;;  %v1399_v54 = vadd.f32 %v4276_v45, %v4274_v29 }
 0x42f   : > { %3185 = vtanh.f32 %v1431_v63  ;;  %v1482_v5 = vadd.f32 %v4278_v28, %v4274_v29  ;;  %v1389_v45 = vadd.f32 %v4262_v10, %v4285_v42  ;;  %v1472_v29 = vadd.f32 %v4266_v21, %v4285_v42 }
 0x430   : > { %3187 = vtanh.f32 %v1514_v41  ;;  %v3168_v53 = vpop.eup %3167  ;;  %v1578_v32 = vpack.c.bf16 %v4342_v3, %v4336_v36  ;;  %v1572_v26 = vpack.c.bf16 %v4325_v4, %v4319_v14  ;;  %v1574_v41 = vpack.c.bf16 %v4329_v58, %v4322_v31 }
 0x431   : > { %3189 = vtanh.f32 %v1508_v18  ;;  %v3170_v56 = vpop.eup %3169  ;;  %v1570_v14 = vpack.c.bf16 %v4316_v33, %v4311_v30  ;;  %v2890_v30 = vld [vmem:[%s4799_s2 + $0x88] sm:$0xff]   ;;  %v2892_v33 = vld [vmem:[%s4799_s2 + $0x98] sm:$0xff]  }
 0x432   : > { %3191 = vtanh.f32 %v1419_v23 }
 0x433   : > { %3193 = vtanh.f32 %v1502_v38 }
 0x434   : > { %3195 = vtanh.f32 %v1415_v16  ;;  %v3172_v17 = vpop.eup %3171 }
 0x435   : > { %3197 = vtanh.f32 %v1498_v51  ;;  %v3174_v27 = vpop.eup %3173  ;;  %v1580_v42 = vpack.c.bf16 %v3172_v17, %v3168_v53  ;;  %v1568_v51 = vpack.c.bf16 %v4313_v24, %v4308_v11  ;;  %v2888_v53 = vld [vmem:[%s4799_s2 + $0x78] sm:$0xff]   ;;  %v2889_v11 = vld [vmem:[%s4799_s2 + $0x80] sm:$0xff]   ;;  %v2891_v24 = vld [vmem:[%s4799_s2 + $0x90] sm:$0xff]  }
 0x436   : > { %3199 = vtanh.f32 %v1409_v60  ;;  %v3176_v0 = vpop.eup %3175  ;;  %v1582_v52 = vpack.c.bf16 %v3174_v27, %v3170_v56  ;;  %v4417_v56 = vpop.permute.xlu1 %1645 }
 0x437   : > { %3201 = vtanh.f32 %v1492_v61  ;;  %v4415_v61 = vpop.permute.xlu0 %1640 }
 0x438   : > { %v3178_v13 = vpop.eup %3177  ;;  %3203 = vtanh.f32 %v1405_v12 }
 0x439   : > { %v3180_v22 = vpop.eup %3179  ;;  %3205 = vtanh.f32 %v1488_v43 }
 0x43a   : > { %v3182_v57 = vpop.eup %3181  ;;  %3207 = vtanh.f32 %v1399_v54  ;;  %v4421_v17 = vpop.permute.xlu1 %1635 }
 0x43b   : > { %v3184_v49 = vpop.eup %3183  ;;  %3209 = vtanh.f32 %v1482_v5  ;;  %v1583_v59 = vpack.c.bf16 %v3182_v57, %v3176_v0  ;;  %v4419_v12 = vpop.permute.xlu0 %1630 }
 0x43c   : > { %v3186_v28 = vpop.eup %3185  ;;  %3211 = vtanh.f32 %v1395_v48 }
 0x43d   : > { %v3188_v19 = vpop.eup %3187  ;;  %3213 = vtanh.f32 %v1478_v9  ;;  %v1584_v34 = vpack.c.bf16 %v3186_v28, %v3178_v13 }
 0x43e   : > { %v3190_v62 = vpop.eup %3189  ;;  %3215 = vtanh.f32 %v1389_v45  ;;  %v1586_v10 = vpack.c.bf16 %v3188_v19, %v3180_v22  ;;  %v4431_v48 = vpop.permute.xlu1 %1625 }
 0x43f   : > { %v3192_v35 = vpop.eup %3191  ;;  %3217 = vtanh.f32 %v1472_v29  ;;  %1694 = vmatprep.subr.bf16.mxu0 %v1584_v34  ;;  %v1585_v21 = vpack.c.bf16 %v3184_v49, %v3190_v62  ;;  %v4427_v0 = vpop.permute.xlu0 %1620 }
 0x440   : > { %v3194_v40 = vpop.eup %3193  ;;  %3219 = vtanh.f32 %v1385_v6  ;;  %1777 = vmatprep.subr.bf16.mxu1 %v1586_v10  ;;  %1695 = vmatpush1.bf16.msra.mxu0 %v1583_v59 }
 0x441   : > { %v3196_v7 = vpop.eup %3195  ;;  %3221 = vtanh.f32 %v1468_v20  ;;  %1778 = vmatpush1.bf16.msra.mxu1 %v1585_v21  ;;  %1696 = vmatprep.subr.bf16.mxu0 %v1580_v42 }
 0x442   : > { %v3198_v47 = vpop.eup %3197  ;;  %1779 = vmatprep.subr.bf16.mxu1 %v1582_v52  ;;  %v1579_v37 = vpack.c.bf16 %v3192_v35, %v3196_v7  ;;  %v4441_v6 = vpop.permute.xlu1 %1615 }
 0x443   : > { %v3200_v39 = vpop.eup %3199  ;;  %v1581_v15 = vpack.c.bf16 %v3194_v40, %v3198_v47  ;;  %v4437_v49 = vpop.permute.xlu0 %1610 }
 0x444   : > { %v3202_v1 = vpop.eup %3201  ;;  %1697 = vmatpush1.bf16.msra.mxu0 %v1579_v37 }
 0x445   : > { %v3204_v25 = vpop.eup %3203  ;;  %1780 = vmatpush1.bf16.msra.mxu1 %v1581_v15  ;;  %1698 = vmatprep.subr.bf16.mxu0 %v1576_v44 }
 0x446   : > { %v3206_v55 = vpop.eup %3205  ;;  %1781 = vmatprep.subr.bf16.mxu1 %v1578_v32  ;;  %v1575_v50 = vpack.c.bf16 %v3200_v39, %v3204_v25  ;;  %v4452_v42 = vpop.permute.xlu1 %1605 }
 0x447   : > { %v3208_v18 = vpop.eup %3207  ;;  %v1577_v63 = vpack.c.bf16 %v3202_v1, %v3206_v55  ;;  %v4447_v10 = vpop.permute.xlu0 %1600 }
 0x448   : > { %v3210_v23 = vpop.eup %3209  ;;  %1699 = vmatpush1.bf16.msra.mxu0 %v1575_v50 }
 0x449   : > { %v3212_v8 = vpop.eup %3211  ;;  %1782 = vmatpush1.bf16.msra.mxu1 %v1577_v63  ;;  %1700 = vmatprep.subr.bf16.mxu0 %v1572_v26 }
 0x44a   : > { %v3214_v38 = vpop.eup %3213  ;;  %1783 = vmatprep.subr.bf16.mxu1 %v1574_v41  ;;  %v1571_v36 = vpack.c.bf16 %v3208_v18, %v3212_v8 }
 0x44b   : > { %v3216_v16 = vpop.eup %3215  ;;  %v1573_v46 = vpack.c.bf16 %v3210_v23, %v3214_v38 }
 0x44c   : > { %v3218_v3 = vpop.eup %3217  ;;  %1701 = vmatpush1.bf16.msra.mxu0 %v1571_v36 }
 0x44d   : > { %v3220_v4 = vpop.eup %3219  ;;  %1784 = vmatpush1.bf16.msra.mxu1 %v1573_v46  ;;  %1702 = vmatprep.subr.bf16.mxu0 %v1568_v51 }
 0x44e   : > { %v3222_v31 = vpop.eup %3221  ;;  %1785 = vmatprep.subr.bf16.mxu1 %v1570_v14  ;;  %v1567_v58 = vpack.c.bf16 %v3216_v16, %v3220_v4 }
 0x44f   : > { %v1569_v60 = vpack.c.bf16 %v3218_v3, %v3222_v31 }
 0x450   : > { %1703 = vmatpush1.bf16.msra.mxu0 %v1567_v58 }
 0x451   : > { %1786 = vmatpush1.bf16.msra.mxu1 %v1569_v60 }
 0x453   : > { %2737 = vmatmul.mubr.msk.bf16.vlgmr.msra.gmra.mxu0 %vm658_vm2, %v2888_v53 }
 0x454   : > { %2742 = vmatmul.mubr.msk.bf16.vlgmr.msra.gmra.mxu1 %vm658_vm2, %v2888_v53  ;;  %1730 = vmatprep.mubr.bf16.mxu0 %v3445_v2 }
 0x455   : > { %1813 = vmatprep.mubr.bf16.mxu1 %v3445_v2 }
 0x45b   : > { %2738 = vmatmul.mubr.msk.bf16.gmra.mxu0 %vm658_vm2, %v2889_v11 }
 0x45c   : > { %2743 = vmatmul.mubr.msk.bf16.gmra.mxu1 %vm658_vm2, %v2889_v11  ;;  %1740 = vmatprep.mubr.bf16.mxu0 %v3445_v2 }
 0x45d   : > { %1823 = vmatprep.mubr.bf16.mxu1 %v3445_v2 }
 0x463   : > { %2739 = vmatmul.mubr.msk.bf16.gmra.mxu0 %vm658_vm2, %v2890_v30 }
 0x464   : > { %2744 = vmatmul.mubr.msk.bf16.gmra.mxu1 %vm658_vm2, %v2890_v30  ;;  %1750 = vmatprep.mubr.bf16.mxu0 %v3445_v2 }
 0x465   : > { %1833 = vmatprep.mubr.bf16.mxu1 %v3445_v2 }
 0x46b   : > { %2740 = vmatmul.mubr.msk.bf16.gmra.mxu0 %vm658_vm2, %v2891_v24 }
 0x46c   : > { %2745 = vmatmul.mubr.msk.bf16.gmra.mxu1 %vm658_vm2, %v2891_v24  ;;  %1760 = vmatprep.mubr.bf16.mxu0 %v3445_v2 }
 0x46d   : > { %1843 = vmatprep.mubr.bf16.mxu1 %v3445_v2 }
 0x473   : > { %2741 = vmatmul.mubr.msk.bf16.gmra.mxu0 %vm658_vm2, %v2892_v33 }
 0x474   : > { %2746 = vmatmul.mubr.msk.bf16.gmra.mxu1 %vm658_vm2, %v2892_v33  ;;  %2058 = vmatprep.mubr.bf16.mxu0 %v3445_v2 }
 0x475   : > { %2141 = vmatprep.mubr.bf16.mxu1 %v3445_v2 }
 0x513   : > { %v4423_v43 = vpop.f32.mrf.mxu0 }
 0x514   : > { %v4425_v27 = vpop.f32.mrf.mxu1 }
 0x515   : > { %v1724_v54 = vpop.f32.mrf.mxu0 }
 0x516   : > { %v1807_v5 = vpop.f32.mrf.mxu1  ;;  %v1725_v35 = vadd.f32 %v1724_v54, %v4447_v10 }
 0x517   : > { %v4429_v13 = vpop.f32.mrf.mxu0  ;;  %v1808_v40 = vadd.f32 %v1807_v5, %v4447_v10 }
 0x518   : > { %v4433_v22 = vpop.f32.mrf.mxu1  ;;  %3223 = vtanh.f32 %v1725_v35 }
 0x519   : > { %v1728_v9 = vpop.f32.mrf.mxu0  ;;  %3225 = vtanh.f32 %v1808_v40 }
 0x51a   : > { %v1811_v57 = vpop.f32.mrf.mxu1  ;;  %v1729_v7 = vadd.f32 %v1728_v9, %v4452_v42 }
 0x51b   : > { %v4435_v45 = vpop.f32.mrf.mxu0  ;;  %v1812_v37 = vadd.f32 %v1811_v57, %v4452_v42 }
 0x51c   : > { %v4439_v29 = vpop.f32.mrf.mxu1  ;;  %3227 = vtanh.f32 %v1729_v7 }
 0x51d   : > { %v1734_v28 = vpop.f32.mrf.mxu0  ;;  %3229 = vtanh.f32 %v1812_v37 }
 0x51e   : > { %v1817_v19 = vpop.f32.mrf.mxu1  ;;  %v1735_v15 = vadd.f32 %v1734_v28, %v4437_v49 }
 0x51f   : > { %v4443_v20 = vpop.f32.mrf.mxu0  ;;  %v1818_v1 = vadd.f32 %v1817_v19, %v4437_v49 }
 0x520   : > { %v4445_v34 = vpop.f32.mrf.mxu1  ;;  %3231 = vtanh.f32 %v1735_v15 }
 0x521   : > { %v1738_v62 = vpop.f32.mrf.mxu0  ;;  %3233 = vtanh.f32 %v1818_v1 }
 0x522   : > { %v1821_v59 = vpop.f32.mrf.mxu1  ;;  %v1739_v25 = vadd.f32 %v1738_v62, %v4441_v6 }
 0x523   : > { %v4450_v21 = vpop.f32.mrf.mxu0  ;;  %v1822_v50 = vadd.f32 %v1821_v59, %v4441_v6 }
 0x524   : > { %v4455_v52 = vpop.f32.mrf.mxu1  ;;  %3235 = vtanh.f32 %v1739_v25 }
 0x525   : > { %v1744_v47 = vpop.f32.mrf.mxu0  ;;  %3237 = vtanh.f32 %v1822_v50  ;;  %v4475_v11 = vpop.eup %3223 }
 0x526   : > { %v1827_v39 = vpop.f32.mrf.mxu1  ;;  %v1745_v63 = vadd.f32 %v1744_v47, %v4427_v0  ;;  %v4478_v33 = vpop.eup %3225 }
 0x527   : > { %v4460_v44 = vpop.f32.mrf.mxu0  ;;  %v1828_v23 = vadd.f32 %v1827_v39, %v4427_v0 }
 0x528   : > { %v4463_v32 = vpop.f32.mrf.mxu1  ;;  %3239 = vtanh.f32 %v1745_v63 }
 0x529   : > { %v1748_v55 = vpop.f32.mrf.mxu0  ;;  %3241 = vtanh.f32 %v1828_v23  ;;  %v4480_v5 = vpop.eup %3227 }
 0x52a   : > { %v1831_v18 = vpop.f32.mrf.mxu1  ;;  %v1749_v8 = vadd.f32 %v1748_v55, %v4431_v48  ;;  %v4483_v28 = vpop.eup %3229 }
 0x52b   : > { %v1752_v26 = vpop.f32.mrf.mxu0  ;;  %v1832_v36 = vadd.f32 %v1831_v18, %v4431_v48 }
 0x52c   : > { %v1835_v41 = vpop.f32.mrf.mxu1  ;;  %3243 = vtanh.f32 %v1749_v8 }
 0x52d   : > { %v1754_v38 = vpop.f32.mrf.mxu0  ;;  %3245 = vtanh.f32 %v1832_v36  ;;  %v4486_v59 = vpop.eup %3231  ;;  %v1836_v36 = vadd.f32 %v1835_v41, %v4419_v12 }
 0x52e   : > { %v1837_v16 = vpop.f32.mrf.mxu1  ;;  %v1755_v46 = vadd.f32 %v1754_v38, %v4419_v12  ;;  %v4489_v7 = vpop.eup %3233 }
 0x52f   : > { %v1756_v51 = vpop.f32.mrf.mxu0  ;;  %v1838_v3 = vadd.f32 %v1837_v16, %v4419_v12 }
 0x530   : > { %v1839_v14 = vpop.f32.mrf.mxu1  ;;  %3247 = vtanh.f32 %v1755_v46  ;;  %v1757_v50 = vadd.f32 %v1756_v51, %v4421_v17 }
 0x531   : > { %v1758_v4 = vpop.f32.mrf.mxu0  ;;  %3249 = vtanh.f32 %v1838_v3  ;;  %v4492_v39 = vpop.eup %3235  ;;  %v1840_v23 = vadd.f32 %v1839_v14, %v4421_v17 }
 0x532   : > { %v1759_v31 = vadd.f32 %v1758_v4, %v4421_v17  ;;  %v1841_v58 = vpop.f32.mrf.mxu1  ;;  %v4496_v55 = vpop.eup %3237 }
 0x533   : > { %v1842_v60 = vadd.f32 %v1841_v58, %v4421_v17  ;;  %v1762_v53 = vpop.f32.mrf.mxu0  ;;  %v1830_v17 = vadd.f32 %v4463_v32, %v4431_v48 }
 0x534   : > { %v1763_v30 = vadd.f32 %v1762_v53, %v4415_v61  ;;  %v1845_v24 = vpop.f32.mrf.mxu1  ;;  %3251 = vtanh.f32 %v1759_v31 }
 0x535   : > { %v1764_v54 = vpop.f32.mrf.mxu0  ;;  %3253 = vtanh.f32 %v1842_v60  ;;  %v1846_v15 = vadd.f32 %v1845_v24, %v4415_v61  ;;  %v4500_v63 = vpop.eup %3239 }
 0x536   : > { %v1765_v9 = vadd.f32 %v1764_v54, %v4415_v61  ;;  %v1847_v57 = vpop.f32.mrf.mxu1  ;;  %3255 = vtanh.f32 %v1763_v30  ;;  %v4503_v8 = vpop.eup %3241 }
 0x537   : > { %v1848_v19 = vadd.f32 %v1847_v57, %v4415_v61  ;;  %v1766_v62 = vpop.f32.mrf.mxu0  ;;  %v1753_v61 = vadd.f32 %v1752_v26, %v4419_v12  ;;  %v1743_v26 = vadd.f32 %v4450_v21, %v4427_v0  ;;  %v1826_v12 = vadd.f32 %v4455_v52, %v4427_v0 }
 0x538   : > { %3257 = vtanh.f32 %v1765_v9  ;;  %v1767_v35 = vadd.f32 %v1766_v62, %v4417_v56  ;;  %v1849_v40 = vpop.f32.mrf.mxu1  ;;  %v1733_v21 = vadd.f32 %v4435_v45, %v4437_v49  ;;  %v1816_v0 = vadd.f32 %v4439_v29, %v4437_v49 }
 0x539   : > { %3259 = vtanh.f32 %v1848_v19  ;;  %v1850_v47 = vadd.f32 %v1849_v40, %v4417_v56  ;;  %v1768_v37 = vpop.f32.mrf.mxu0  ;;  %v4506_v38 = vpop.eup %3243  ;;  %v1723_v45 = vadd.f32 %v4423_v43, %v4447_v10  ;;  %v1806_v49 = vadd.f32 %v4425_v27, %v4447_v10 }
 0x53a   : > { %3261 = vtanh.f32 %v1767_v35  ;;  %v1769_v1 = vadd.f32 %v1768_v37, %v4417_v56  ;;  %v1851_v25 = vpop.f32.mrf.mxu1  ;;  %v4509_v16 = vpop.eup %3245  ;;  %v1914_v19 = vpack.c.bf16 %v4506_v38, %v4500_v63 }
 0x53b   : > { %3263 = vtanh.f32 %v1850_v47  ;;  %v1852_v18 = vadd.f32 %v1851_v25, %v4417_v56  ;;  %v1747_v56 = vadd.f32 %v4460_v44, %v4431_v48  ;;  %v1737_v44 = vadd.f32 %v4443_v20, %v4441_v6 }
 0x53c   : > { %3265 = vtanh.f32 %v1769_v1  ;;  %v1820_v48 = vadd.f32 %v4445_v34, %v4441_v6  ;;  %v1727_v20 = vadd.f32 %v4429_v13, %v4452_v42  ;;  %v1810_v6 = vadd.f32 %v4433_v22, %v4452_v42 }
 0x53d   : > { %3267 = vtanh.f32 %v1852_v18  ;;  %v3248_v46 = vpop.eup %3247  ;;  %v1916_v35 = vpack.c.bf16 %v4509_v16, %v4503_v8  ;;  %v1910_v25 = vpack.c.bf16 %v4492_v39, %v4486_v59  ;;  %v1912_v18 = vpack.c.bf16 %v4496_v55, %v4489_v7 }
 0x53e   : > { %3269 = vtanh.f32 %v1846_v15  ;;  %v3250_v51 = vpop.eup %3249  ;;  %v1908_v59 = vpack.c.bf16 %v4483_v28, %v4478_v33  ;;  %v2895_v33 = vld [vmem:[%s4799_s2 + $0xb0] sm:$0xff]   ;;  %v2897_v28 = vld [vmem:[%s4799_s2 + $0xc0] sm:$0xff]  }
 0x53f   : > { %3271 = vtanh.f32 %v1757_v50 }
 0x540   : > { %3273 = vtanh.f32 %v1840_v23 }
 0x541   : > { %3275 = vtanh.f32 %v1753_v61  ;;  %v3252_v3 = vpop.eup %3251 }
 0x542   : > { %3277 = vtanh.f32 %v1836_v36  ;;  %v3254_v41 = vpop.eup %3253  ;;  %v1918_v42 = vpack.c.bf16 %v3252_v3, %v3248_v46  ;;  %v1906_v36 = vpack.c.bf16 %v4480_v5, %v4475_v11  ;;  %v2893_v46 = vld [vmem:[%s4799_s2 + $0xa0] sm:$0xff]   ;;  %v2894_v11 = vld [vmem:[%s4799_s2 + $0xa8] sm:$0xff]   ;;  %v2896_v5 = vld [vmem:[%s4799_s2 + $0xb8] sm:$0xff]  }
 0x543   : > { %3279 = vtanh.f32 %v1747_v56  ;;  %v3256_v14 = vpop.eup %3255  ;;  %v1920_v43 = vpack.c.bf16 %v3254_v41, %v3250_v51  ;;  %v4584_v51 = vpop.permute.xlu1 %1983 }
 0x544   : > { %3281 = vtanh.f32 %v1830_v17  ;;  %v4582_v17 = vpop.permute.xlu0 %1978 }
 0x545   : > { %v3258_v32 = vpop.eup %3257  ;;  %3283 = vtanh.f32 %v1743_v26 }
 0x546   : > { %v3260_v4 = vpop.eup %3259  ;;  %3285 = vtanh.f32 %v1826_v12 }
 0x547   : > { %v3262_v52 = vpop.eup %3261  ;;  %3287 = vtanh.f32 %v1737_v44  ;;  %v4588_v3 = vpop.permute.xlu1 %1973 }
 0x548   : > { %v3264_v31 = vpop.eup %3263  ;;  %3289 = vtanh.f32 %v1820_v48  ;;  %v1921_v53 = vpack.c.bf16 %v3262_v52, %v3256_v14  ;;  %v4586_v26 = vpop.permute.xlu0 %1968 }
 0x549   : > { %v3266_v34 = vpop.eup %3265  ;;  %3291 = vtanh.f32 %v1733_v21 }
 0x54a   : > { %v3268_v58 = vpop.eup %3267  ;;  %3293 = vtanh.f32 %v1816_v0  ;;  %v1922_v29 = vpack.c.bf16 %v3266_v34, %v3258_v32 }
 0x54b   : > { %v3270_v60 = vpop.eup %3269  ;;  %3295 = vtanh.f32 %v1727_v20  ;;  %v1924_v13 = vpack.c.bf16 %v3268_v58, %v3260_v4  ;;  %v4598_v21 = vpop.permute.xlu1 %1963 }
 0x54c   : > { %v3272_v30 = vpop.eup %3271  ;;  %3297 = vtanh.f32 %v1810_v6  ;;  %2032 = vmatprep.subr.bf16.mxu0 %v1922_v29  ;;  %v1923_v22 = vpack.c.bf16 %v3264_v31, %v3270_v60  ;;  %v4594_v14 = vpop.permute.xlu0 %1958 }
 0x54d   : > { %v3274_v24 = vpop.eup %3273  ;;  %3299 = vtanh.f32 %v1723_v45  ;;  %2115 = vmatprep.subr.bf16.mxu1 %v1924_v13  ;;  %2033 = vmatpush1.bf16.msra.mxu0 %v1921_v53 }
 0x54e   : > { %v3276_v54 = vpop.eup %3275  ;;  %3301 = vtanh.f32 %v1806_v49  ;;  %2116 = vmatpush1.bf16.msra.mxu1 %v1923_v22  ;;  %2034 = vmatprep.subr.bf16.mxu0 %v1918_v42 }
 0x54f   : > { %v3278_v27 = vpop.eup %3277  ;;  %2117 = vmatprep.subr.bf16.mxu1 %v1920_v43  ;;  %v1917_v10 = vpack.c.bf16 %v3272_v30, %v3276_v54  ;;  %v4608_v45 = vpop.permute.xlu1 %1953 }
 0x550   : > { %v3280_v9 = vpop.eup %3279  ;;  %v1919_v57 = vpack.c.bf16 %v3274_v24, %v3278_v27  ;;  %v4604_v31 = vpop.permute.xlu0 %1948 }
 0x551   : > { %v3282_v62 = vpop.eup %3281  ;;  %2035 = vmatpush1.bf16.msra.mxu0 %v1917_v10 }
 0x552   : > { %v3284_v40 = vpop.eup %3283  ;;  %2118 = vmatpush1.bf16.msra.mxu1 %v1919_v57  ;;  %2036 = vmatprep.subr.bf16.mxu0 %v1914_v19 }
 0x553   : > { %v3286_v47 = vpop.eup %3285  ;;  %2119 = vmatprep.subr.bf16.mxu1 %v1916_v35  ;;  %v1913_v37 = vpack.c.bf16 %v3280_v9, %v3284_v40  ;;  %v4619_v42 = vpop.permute.xlu1 %1943 }
 0x554   : > { %v3288_v15 = vpop.eup %3287  ;;  %v1915_v1 = vpack.c.bf16 %v3282_v62, %v3286_v47  ;;  %v4614_v13 = vpop.permute.xlu0 %1938 }
 0x555   : > { %v3290_v50 = vpop.eup %3289  ;;  %2037 = vmatpush1.bf16.msra.mxu0 %v1913_v37 }
 0x556   : > { %v3292_v63 = vpop.eup %3291  ;;  %2120 = vmatpush1.bf16.msra.mxu1 %v1915_v1  ;;  %2038 = vmatprep.subr.bf16.mxu0 %v1910_v25 }
 0x557   : > { %v3294_v23 = vpop.eup %3293  ;;  %2121 = vmatprep.subr.bf16.mxu1 %v1912_v18  ;;  %v1909_v8 = vpack.c.bf16 %v3288_v15, %v3292_v63 }
 0x558   : > { %v3296_v61 = vpop.eup %3295  ;;  %v1911_v38 = vpack.c.bf16 %v3290_v50, %v3294_v23 }
 0x559   : > { %v3298_v16 = vpop.eup %3297  ;;  %2039 = vmatpush1.bf16.msra.mxu0 %v1909_v8 }
 0x55a   : > { %v3300_v39 = vpop.eup %3299  ;;  %2122 = vmatpush1.bf16.msra.mxu1 %v1911_v38  ;;  %2040 = vmatprep.subr.bf16.mxu0 %v1906_v36 }
 0x55b   : > { %v3302_v7 = vpop.eup %3301  ;;  %2123 = vmatprep.subr.bf16.mxu1 %v1908_v59  ;;  %v1905_v55 = vpack.c.bf16 %v3296_v61, %v3300_v39 }
 0x55c   : > { %v1907_v56 = vpack.c.bf16 %v3298_v16, %v3302_v7 }
 0x55d   : > { %2041 = vmatpush1.bf16.msra.mxu0 %v1905_v55 }
 0x55e   : > { %2124 = vmatpush1.bf16.msra.mxu1 %v1907_v56 }
 0x560   : > { %2772 = vmatmul.mubr.msk.bf16.vlgmr.msra.gmra.mxu0 %vm658_vm2, %v2893_v46 }
 0x561   : > { %2777 = vmatmul.mubr.msk.bf16.vlgmr.msra.gmra.mxu1 %vm658_vm2, %v2893_v46  ;;  %2068 = vmatprep.mubr.bf16.mxu0 %v3445_v2 }
 0x562   : > { %2151 = vmatprep.mubr.bf16.mxu1 %v3445_v2 }
 0x568   : > { %2773 = vmatmul.mubr.msk.bf16.gmra.mxu0 %vm658_vm2, %v2894_v11 }
 0x569   : > { %2778 = vmatmul.mubr.msk.bf16.gmra.mxu1 %vm658_vm2, %v2894_v11  ;;  %2078 = vmatprep.mubr.bf16.mxu0 %v3445_v2 }
 0x56a   : > { %2161 = vmatprep.mubr.bf16.mxu1 %v3445_v2 }
 0x570   : > { %2774 = vmatmul.mubr.msk.bf16.gmra.mxu0 %vm658_vm2, %v2895_v33 }
 0x571   : > { %2779 = vmatmul.mubr.msk.bf16.gmra.mxu1 %vm658_vm2, %v2895_v33  ;;  %2088 = vmatprep.mubr.bf16.mxu0 %v3445_v2 }
 0x572   : > { %2171 = vmatprep.mubr.bf16.mxu1 %v3445_v2 }
 0x578   : > { %2775 = vmatmul.mubr.msk.bf16.gmra.mxu0 %vm658_vm2, %v2896_v5 }
 0x579   : > { %2780 = vmatmul.mubr.msk.bf16.gmra.mxu1 %vm658_vm2, %v2896_v5  ;;  %2098 = vmatprep.mubr.bf16.mxu0 %v3445_v2 }
 0x57a   : > { %2181 = vmatprep.mubr.bf16.mxu1 %v3445_v2 }
 0x580   : > { %2776 = vmatmul.mubr.msk.bf16.gmra.mxu0 %vm658_vm2, %v2897_v28 }
 0x581   : > { %2781 = vmatmul.mubr.msk.bf16.gmra.mxu1 %vm658_vm2, %v2897_v28  ;;  %2387 = vmatprep.mubr.bf16.mxu0 %v3445_v2 }
 0x582   : > { %2452 = vmatprep.mubr.bf16.mxu1 %v3445_v2 }
 0x620   : > { %v4590_v12 = vpop.f32.mrf.mxu0 }
 0x621   : > { %v4592_v41 = vpop.f32.mrf.mxu1 }
 0x622   : > { %v2062_v44 = vpop.f32.mrf.mxu0 }
 0x623   : > { %v2145_v48 = vpop.f32.mrf.mxu1  ;;  %v2063_v30 = vadd.f32 %v2062_v44, %v4614_v13 }
 0x624   : > { %v4596_v32 = vpop.f32.mrf.mxu0  ;;  %v2146_v24 = vadd.f32 %v2145_v48, %v4614_v13 }
 0x625   : > { %v4600_v4 = vpop.f32.mrf.mxu1  ;;  %3303 = vtanh.f32 %v2063_v30 }
 0x626   : > { %v2066_v0 = vpop.f32.mrf.mxu0  ;;  %3305 = vtanh.f32 %v2146_v24 }
 0x627   : > { %v2149_v52 = vpop.f32.mrf.mxu1  ;;  %v2067_v54 = vadd.f32 %v2066_v0, %v4619_v42 }
 0x628   : > { %v4602_v20 = vpop.f32.mrf.mxu0  ;;  %v2150_v10 = vadd.f32 %v2149_v52, %v4619_v42 }
 0x629   : > { %v4606_v6 = vpop.f32.mrf.mxu1  ;;  %3307 = vtanh.f32 %v2067_v54 }
 0x62a   : > { %v2072_v34 = vpop.f32.mrf.mxu0  ;;  %3309 = vtanh.f32 %v2150_v10 }
 0x62b   : > { %v2155_v58 = vpop.f32.mrf.mxu1  ;;  %v2073_v57 = vadd.f32 %v2072_v34, %v4604_v31 }
 0x62c   : > { %v4610_v49 = vpop.f32.mrf.mxu0  ;;  %v2156_v62 = vadd.f32 %v2155_v58, %v4604_v31 }
 0x62d   : > { %v4612_v29 = vpop.f32.mrf.mxu1  ;;  %3311 = vtanh.f32 %v2073_v57 }
 0x62e   : > { %v2076_v60 = vpop.f32.mrf.mxu0  ;;  %3313 = vtanh.f32 %v2156_v62 }
 0x62f   : > { %v2159_v53 = vpop.f32.mrf.mxu1  ;;  %v2077_v40 = vadd.f32 %v2076_v60, %v4608_v45 }
 0x630   : > { %v4617_v22 = vpop.f32.mrf.mxu0  ;;  %v2160_v37 = vadd.f32 %v2159_v53, %v4608_v45 }
 0x631   : > { %v4622_v43 = vpop.f32.mrf.mxu1  ;;  %3315 = vtanh.f32 %v2077_v40 }
 0x632   : > { %v2082_v27 = vpop.f32.mrf.mxu0  ;;  %3317 = vtanh.f32 %v2160_v37  ;;  %v4642_v11 = vpop.eup %3303 }
 0x633   : > { %v2165_v9 = vpop.f32.mrf.mxu1  ;;  %v2083_v1 = vadd.f32 %v2082_v27, %v4594_v14  ;;  %v4645_v28 = vpop.eup %3305 }
 0x634   : > { %v4627_v19 = vpop.f32.mrf.mxu0  ;;  %v2166_v50 = vadd.f32 %v2165_v9, %v4594_v14 }
 0x635   : > { %v4630_v35 = vpop.f32.mrf.mxu1  ;;  %3319 = vtanh.f32 %v2083_v1 }
 0x636   : > { %v2086_v47 = vpop.f32.mrf.mxu0  ;;  %3321 = vtanh.f32 %v2166_v50  ;;  %v4647_v48 = vpop.eup %3307 }
 0x637   : > { %v2169_v15 = vpop.f32.mrf.mxu1  ;;  %v2087_v63 = vadd.f32 %v2086_v47, %v4598_v21  ;;  %v4650_v34 = vpop.eup %3309 }
 0x638   : > { %v2090_v25 = vpop.f32.mrf.mxu0  ;;  %v2170_v8 = vadd.f32 %v2169_v15, %v4598_v21 }
 0x639   : > { %v2173_v18 = vpop.f32.mrf.mxu1  ;;  %3323 = vtanh.f32 %v2087_v63 }
 0x63a   : > { %v2092_v23 = vpop.f32.mrf.mxu0  ;;  %3325 = vtanh.f32 %v2170_v8  ;;  %v4653_v53 = vpop.eup %3311  ;;  %v2174_v8 = vadd.f32 %v2173_v18, %v4586_v26 }
 0x63b   : > { %v2175_v61 = vpop.f32.mrf.mxu1  ;;  %v2093_v38 = vadd.f32 %v2092_v23, %v4586_v26  ;;  %v4656_v54 = vpop.eup %3313 }
 0x63c   : > { %v2094_v36 = vpop.f32.mrf.mxu0  ;;  %v2176_v16 = vadd.f32 %v2175_v61, %v4586_v26 }
 0x63d   : > { %v2177_v59 = vpop.f32.mrf.mxu1  ;;  %3327 = vtanh.f32 %v2093_v38  ;;  %v2095_v37 = vadd.f32 %v2094_v36, %v4588_v3 }
 0x63e   : > { %v2096_v39 = vpop.f32.mrf.mxu0  ;;  %3329 = vtanh.f32 %v2176_v16  ;;  %v4659_v9 = vpop.eup %3315  ;;  %v2178_v50 = vadd.f32 %v2177_v59, %v4588_v3 }
 0x63f   : > { %v2097_v7 = vadd.f32 %v2096_v39, %v4588_v3  ;;  %v2179_v55 = vpop.f32.mrf.mxu1  ;;  %v4663_v47 = vpop.eup %3317 }
 0x640   : > { %v2180_v56 = vadd.f32 %v2179_v55, %v4588_v3  ;;  %v2100_v46 = vpop.f32.mrf.mxu0  ;;  %v2168_v3 = vadd.f32 %v4630_v35, %v4598_v21 }
 0x641   : > { %v2101_v33 = vadd.f32 %v2100_v46, %v4582_v17  ;;  %v2183_v5 = vpop.f32.mrf.mxu1  ;;  %3331 = vtanh.f32 %v2097_v7 }
 0x642   : > { %v2102_v44 = vpop.f32.mrf.mxu0  ;;  %3333 = vtanh.f32 %v2180_v56  ;;  %v2184_v57 = vadd.f32 %v2183_v5, %v4582_v17  ;;  %v4667_v1 = vpop.eup %3319 }
 0x643   : > { %v2103_v0 = vadd.f32 %v2102_v44, %v4582_v17  ;;  %v2185_v52 = vpop.f32.mrf.mxu1  ;;  %3335 = vtanh.f32 %v2101_v33  ;;  %v4670_v63 = vpop.eup %3321 }
 0x644   : > { %v2186_v58 = vadd.f32 %v2185_v52, %v4582_v17  ;;  %v2104_v60 = vpop.f32.mrf.mxu0  ;;  %v2091_v17 = vadd.f32 %v2090_v25, %v4586_v26  ;;  %v2081_v25 = vadd.f32 %v4617_v22, %v4594_v14  ;;  %v2164_v26 = vadd.f32 %v4622_v43, %v4594_v14 }
 0x645   : > { %3337 = vtanh.f32 %v2103_v0  ;;  %v2105_v30 = vadd.f32 %v2104_v60, %v4584_v51  ;;  %v2187_v24 = vpop.f32.mrf.mxu1  ;;  %v2071_v22 = vadd.f32 %v4602_v20, %v4604_v31  ;;  %v2154_v14 = vadd.f32 %v4606_v6, %v4604_v31 }
 0x646   : > { %3339 = vtanh.f32 %v2186_v58  ;;  %v2188_v27 = vadd.f32 %v2187_v24, %v4584_v51  ;;  %v2106_v10 = vpop.f32.mrf.mxu0  ;;  %v4673_v23 = vpop.eup %3323  ;;  %v2061_v20 = vadd.f32 %v4590_v12, %v4614_v13  ;;  %v2144_v31 = vadd.f32 %v4592_v41, %v4614_v13 }
 0x647   : > { %3341 = vtanh.f32 %v2105_v30  ;;  %v2107_v62 = vadd.f32 %v2106_v10, %v4584_v51  ;;  %v2189_v40 = vpop.f32.mrf.mxu1  ;;  %v4676_v61 = vpop.eup %3325  ;;  %v2252_v58 = vpack.c.bf16 %v4673_v23, %v4667_v1 }
 0x648   : > { %3343 = vtanh.f32 %v2188_v27  ;;  %v2190_v15 = vadd.f32 %v2189_v40, %v4584_v51  ;;  %v2085_v51 = vadd.f32 %v4627_v19, %v4598_v21  ;;  %v2075_v19 = vadd.f32 %v4610_v49, %v4608_v45 }
 0x649   : > { %3345 = vtanh.f32 %v2107_v62  ;;  %v2158_v21 = vadd.f32 %v4612_v29, %v4608_v45  ;;  %v2065_v49 = vadd.f32 %v4596_v32, %v4619_v42  ;;  %v2148_v45 = vadd.f32 %v4600_v4, %v4619_v42 }
 0x64a   : > { %3347 = vtanh.f32 %v2190_v15  ;;  %v3328_v38 = vpop.eup %3327  ;;  %v2254_v30 = vpack.c.bf16 %v4676_v61, %v4670_v63  ;;  %v2248_v40 = vpack.c.bf16 %v4659_v9, %v4653_v53  ;;  %v2250_v15 = vpack.c.bf16 %v4663_v47, %v4656_v54 }
 0x64b   : > { %3349 = vtanh.f32 %v2184_v57  ;;  %v3330_v36 = vpop.eup %3329  ;;  %v2246_v53 = vpack.c.bf16 %v4650_v34, %v4645_v28  ;;  %v2900_v28 = vld [vmem:[%s4799_s2 + $0xd8] sm:$0xff]   ;;  %v2902_v34 = vld [vmem:[%s4799_s2 + $0xe8] sm:$0xff]  }
 0x64c   : > { %3351 = vtanh.f32 %v2095_v37 }
 0x64d   : > { %3353 = vtanh.f32 %v2178_v50 }
 0x64e   : > { %3355 = vtanh.f32 %v2091_v17  ;;  %v3332_v16 = vpop.eup %3331 }
 0x64f   : > { %3357 = vtanh.f32 %v2174_v8  ;;  %v3334_v18 = vpop.eup %3333  ;;  %v2256_v42 = vpack.c.bf16 %v3332_v16, %v3328_v38  ;;  %v2244_v8 = vpack.c.bf16 %v4647_v48, %v4642_v11  ;;  %v2898_v38 = vld [vmem:[%s4799_s2 + $0xc8] sm:$0xff]   ;;  %v2899_v11 = vld [vmem:[%s4799_s2 + $0xd0] sm:$0xff]   ;;  %v2901_v48 = vld [vmem:[%s4799_s2 + $0xe0] sm:$0xff]  }
 0x650   : > { %3359 = vtanh.f32 %v2085_v51  ;;  %v3336_v59 = vpop.eup %3335  ;;  %v2258_v12 = vpack.c.bf16 %v3334_v18, %v3330_v36 }
 0x651   : > { %3361 = vtanh.f32 %v2168_v3  ;;  %v3446_v3 = vmov 1966171168  }
 0x652   : > { %v3338_v35 = vpop.eup %3337  ;;  %3363 = vtanh.f32 %v2081_v25  ;;  %v2492_v36 = vunpack.c.l.s4 %v3446_v3  ;;  %v2494_v25 = vlaneseq }
 0x653   : > { %v3340_v39 = vpop.eup %3339  ;;  %3365 = vtanh.f32 %v2164_v26 }
 0x654   : > { %v3342_v43 = vpop.eup %3341  ;;  %3367 = vtanh.f32 %v2075_v19  ;;  %v2493_v16 = vunpack.c.0.s8 %v2492_v36  ;;  %v2495_v26 = vshrl.u32 %v2494_v25, 7  ;;  %vm2516_vm3 = vcmp.lt.s32.totalorder %v2494_v25, 512 }
 0x655   : > { %v3344_v7 = vpop.eup %3343  ;;  %3369 = vtanh.f32 %v2158_v21  ;;  %v2259_v46 = vpack.c.bf16 %v3342_v43, %v3336_v59  ;;  %v2277_v59 = vpop.permute.xlu0 %2276 }
 0x656   : > { %v3346_v29 = vpop.eup %3345  ;;  %3371 = vtanh.f32 %v2071_v22  ;;  %v2496_v22 = vsub.s32 %v2493_v16, %v2495_v26 }
 0x657   : > { %v3348_v55 = vpop.eup %3347  ;;  %3373 = vtanh.f32 %v2154_v14  ;;  %v2260_v6 = vpack.c.bf16 %v3346_v29, %v3338_v35 }
 0x658   : > { %v3350_v56 = vpop.eup %3349  ;;  %3375 = vtanh.f32 %v2065_v49  ;;  %v2262_v32 = vpack.c.bf16 %v3348_v55, %v3340_v39 }
 0x659   : > { %v3352_v33 = vpop.eup %3351  ;;  %3377 = vtanh.f32 %v2148_v45  ;;  %2361 = vmatprep.subr.bf16.mxu0 %v2260_v6  ;;  %v2261_v4 = vpack.c.bf16 %v3344_v7, %v3350_v56 }
 0x65a   : > { %v3354_v5 = vpop.eup %3353  ;;  %3379 = vtanh.f32 %v2061_v20  ;;  %2426 = vmatprep.subr.bf16.mxu1 %v2262_v32  ;;  %2362 = vmatpush1.bf16.msra.mxu0 %v2259_v46 }
 0x65b   : > { %v3356_v44 = vpop.eup %3355  ;;  %3381 = vtanh.f32 %v2144_v31  ;;  %2427 = vmatpush1.bf16.msra.mxu1 %v2261_v4  ;;  %2363 = vmatprep.subr.bf16.mxu0 %v2256_v42 }
 0x65c   : > { %v3358_v41 = vpop.eup %3357  ;;  %2428 = vmatprep.subr.bf16.mxu1 %v2258_v12  ;;  %v2255_v13 = vpack.c.bf16 %v3352_v33, %v3356_v44 }
 0x65d   : > { %v3360_v0 = vpop.eup %3359  ;;  %v2257_v52 = vpack.c.bf16 %v3354_v5, %v3358_v41 }
 0x65e   : > { %v3362_v60 = vpop.eup %3361  ;;  %2364 = vmatpush1.bf16.msra.mxu0 %v2255_v13 }
 0x65f   : > { %v3364_v24 = vpop.eup %3363  ;;  %2429 = vmatpush1.bf16.msra.mxu1 %v2257_v52  ;;  %2365 = vmatprep.subr.bf16.mxu0 %v2252_v58 }
 0x660   : > { %v3366_v27 = vpop.eup %3365  ;;  %2430 = vmatprep.subr.bf16.mxu1 %v2254_v30  ;;  %v2251_v10 = vpack.c.bf16 %v3360_v0, %v3364_v24 }
 0x661   : > { %v3368_v57 = vpop.eup %3367  ;;  %v2253_v62 = vpack.c.bf16 %v3362_v60, %v3366_v27 }
 0x662   : > { %v3370_v37 = vpop.eup %3369  ;;  %2366 = vmatpush1.bf16.msra.mxu0 %v2251_v10 }
 0x663   : > { %v3372_v1 = vpop.eup %3371  ;;  %2431 = vmatpush1.bf16.msra.mxu1 %v2253_v62  ;;  %2367 = vmatprep.subr.bf16.mxu0 %v2248_v40 }
 0x664   : > { %v3374_v50 = vpop.eup %3373  ;;  %2432 = vmatprep.subr.bf16.mxu1 %v2250_v15  ;;  %v2247_v63 = vpack.c.bf16 %v3368_v57, %v3372_v1 }
 0x665   : > { %v3376_v17 = vpop.eup %3375  ;;  %v2249_v23 = vpack.c.bf16 %v3370_v37, %v3374_v50 }
 0x666   : > { %v3378_v61 = vpop.eup %3377  ;;  %2368 = vmatpush1.bf16.msra.mxu0 %v2247_v63 }
 0x667   : > { %v3380_v9 = vpop.eup %3379  ;;  %2433 = vmatpush1.bf16.msra.mxu1 %v2249_v23  ;;  %2369 = vmatprep.subr.bf16.mxu0 %v2244_v8 }
 0x668   : > { %v3382_v54 = vpop.eup %3381  ;;  %2434 = vmatprep.subr.bf16.mxu1 %v2246_v53  ;;  %v2243_v47 = vpack.c.bf16 %v3376_v17, %v3380_v9 }
 0x669   : > { %v2245_v51 = vpack.c.bf16 %v3378_v61, %v3382_v54 }
 0x66a   : > { %2370 = vmatpush1.bf16.msra.mxu0 %v2243_v47 }
 0x66b   : > { %2435 = vmatpush1.bf16.msra.mxu1 %v2245_v51 }
 0x66d   : > { %2807 = vmatmul.mubr.msk.bf16.vlgmr.msra.gmra.mxu0 %vm658_vm2, %v2898_v38 }
 0x66e   : > { %2812 = vmatmul.mubr.msk.bf16.vlgmr.msra.gmra.mxu1 %vm658_vm2, %v2898_v38  ;;  %2395 = vmatprep.mubr.bf16.mxu0 %v3445_v2 }
 0x66f   : > { %2460 = vmatprep.mubr.bf16.mxu1 %v3445_v2 }
 0x675   : > { %2808 = vmatmul.mubr.msk.bf16.gmra.mxu0 %vm658_vm2, %v2899_v11 }
 0x676   : > { %2813 = vmatmul.mubr.msk.bf16.gmra.mxu1 %vm658_vm2, %v2899_v11  ;;  %2401 = vmatprep.mubr.bf16.mxu0 %v3445_v2 }
 0x677   : > { %2466 = vmatprep.mubr.bf16.mxu1 %v3445_v2 }
 0x67d   : > { %2809 = vmatmul.mubr.msk.bf16.gmra.mxu0 %vm658_vm2, %v2900_v28 }
 0x67e   : > { %2814 = vmatmul.mubr.msk.bf16.gmra.mxu1 %vm658_vm2, %v2900_v28  ;;  %2407 = vmatprep.mubr.bf16.mxu0 %v3445_v2 }
 0x67f   : > { %2472 = vmatprep.mubr.bf16.mxu1 %v3445_v2 }
 0x685   : > { %2810 = vmatmul.mubr.msk.bf16.gmra.mxu0 %vm658_vm2, %v2901_v48 }
 0x686   : > { %2815 = vmatmul.mubr.msk.bf16.gmra.mxu1 %vm658_vm2, %v2901_v48  ;;  %2413 = vmatprep.mubr.bf16.mxu0 %v3445_v2 }
 0x687   : > { %2478 = vmatprep.mubr.bf16.mxu1 %v3445_v2 }
 0x68d   : > { %2811 = vmatmul.mubr.msk.bf16.gmra.mxu0 %vm658_vm2, %v2902_v34 }
 0x68e   : > { %2816 = vmatmul.mubr.msk.bf16.gmra.mxu1 %vm658_vm2, %v2902_v34 }
 0x72d   : > { %v2389_v18 = vpop.f32.mrf.mxu0 }
 0x72e   : > { %v2454_v19 = vpop.f32.mrf.mxu1  ;;  %v2390_v2 = vadd.f32 %v2389_v18, %v2277_v59 }
 0x72f   : > { %v2391_v21 = vpop.f32.mrf.mxu0  ;;  %v2455_v14 = vadd.f32 %v2454_v19, %v2277_v59 }
 0x730   : > { %v2392_v35 = vadd.f32 %v2391_v21, %v2277_v59  ;;  %v2456_v39 = vpop.f32.mrf.mxu1 }
 0x731   : > { %v2457_v43 = vadd.f32 %v2456_v39, %v2277_v59  ;;  %v2393_v49 = vpop.f32.mrf.mxu0 }
 0x732   : > { %v2489_v7 = vcombine.low %v2390_v2, %v2392_v35  ;;  %v2458_v45 = vpop.f32.mrf.mxu1 }
 0x733   : > { %v2490_v29 = vcombine.low %v2455_v14, %v2457_v43  ;;  %v2394_v20 = vpop.f32.mrf.mxu0 }
 0x734   : > { %v2497_v55 = vrot.slane %v2489_v7, %v2496_v22  ;;  %v2459_v31 = vpop.f32.mrf.mxu1 }
 0x735   : > { %v2504_v6 = vrot.slane %v2490_v29, %v2496_v22  ;;  %v2397_v56 = vpop.f32.mrf.mxu0 }
 0x736   : > { %v2462_v32 = vpop.f32.mrf.mxu1 }
 0x737   : > { %v2505_v46 = vcombine.low %v2497_v55, %v2504_v6  ;;  %v2398_v33 = vpop.f32.mrf.mxu0 }
 0x738   : > { %v2463_v4 = vpop.f32.mrf.mxu1 }
 0x739   : > { %v2399_v42 = vpop.f32.mrf.mxu0  ;;  %v2512_v5 = vrot.slane %v2505_v46, %v2496_v22 }
 0x73a   : > { %v2464_v12 = vpop.f32.mrf.mxu1 }
 0x73b   : > { %v2400_v44 = vpop.f32.mrf.mxu0  ;;  %2518 = vst.msk [vmem:[%s191_s14] sm:$0xf] %vm2516_vm3, %v2512_v5 }
 0x73c   : > { %v2465_v41 = vpop.f32.mrf.mxu1 }
 0x73d   : > { %3396 = shalt.err (!%p3393_p3)
}
 0x73e   : > { %s3397_s6 = scalar_lea.hbm %s4754_s27, 64  ;;  %s3401_s9 = scalar_lea.hbm %s4801_s4, 128 }
 0x73f   : > { %p3398_p4 = scmp.ne.s32.totalorder %s4754_s27, %s3397_s6  ;;  %p3402_p9 = scmp.lt.s32.totalorder %s4754_s27, %s4801_s4 }
 0x740   : > { %p3403_p10 = scmp.lt.s32.totalorder %s3401_s9, %s3397_s6 }
 0x741   : > { %p3399_p7 = pnand %p3398_p4, %p3511_p5 }
 0x742   : > { %p3404_p11 = por %p3403_p10, %p3402_p9 }
 0x743   : > { %p3400_p8 = pneg %p3399_p7 }
 0x745   : > { %p3405_p12 = pnand %p3404_p11, %p3400_p8 }
 0x747   : > { %3408 = shalt.err (!%p3405_p12)
}
 0x748   : > { %2823 = dma.vmem_to_hbm [thread:$0]  (%p3511_p5), %s4756_s20, 64, %s4754_s27, %s2520_s19   ;;  %v2403_v13 = vpop.f32.mrf.mxu0  ;;  %v2468_v0 = vpop.f32.mrf.mxu1 }
 0x74a   : > { %v2404_v52 = vpop.f32.mrf.mxu0  ;;  %v2469_v58 = vpop.f32.mrf.mxu1 }
 0x74c   : > { %v2405_v60 = vpop.f32.mrf.mxu0  ;;  %v2470_v30 = vpop.f32.mrf.mxu1 }
 0x74e   : > { %v2406_v24 = vpop.f32.mrf.mxu0  ;;  %v2471_v27 = vpop.f32.mrf.mxu1 }
 0x750   : > { %v2409_v10 = vpop.f32.mrf.mxu0  ;;  %v2474_v57 = vpop.f32.mrf.mxu1 }
 0x752   : > { %v2410_v62 = vpop.f32.mrf.mxu0  ;;  %v2475_v40 = vpop.f32.mrf.mxu1 }
 0x754   : > { %v2411_v37 = vpop.f32.mrf.mxu0  ;;  %v2476_v15 = vpop.f32.mrf.mxu1 }
 0x756   : > { %v2412_v1 = vpop.f32.mrf.mxu0  ;;  %v2477_v50 = vpop.f32.mrf.mxu1 }
 0x758   : > { %v2415_v63 = vpop.f32.mrf.mxu0  ;;  %v2480_v17 = vpop.f32.mrf.mxu1 }
 0x75a   : > { %v2416_v23 = vpop.f32.mrf.mxu0  ;;  %v2481_v8 = vpop.f32.mrf.mxu1 }
 0x75c   : > { %v2417_v61 = vpop.f32.mrf.mxu0  ;;  %v2482_v53 = vpop.f32.mrf.mxu1 }
 0x75e   : > { %v2418_v9 = vpop.f32.mrf.mxu0  ;;  %v2483_v54 = vpop.f32.mrf.mxu1 }
 0x75f PF: > { %p2829_p5 = scmp.ge.s32.totalorder %s3443_s18, 2  ;;  %s2546_s25 = sand.u32 1, %s3431_s15  }
 0x760   : > { %s2547_s12 = scalar_lea.sflag [#allocation3], %s2546_s25 }
 0x761   : > { %p2826_p13 = pnand %p2829_p5, %p3515_p6 }
 0x763   : > { %p2827_p0 = pneg %p2826_p13 }
 0x765   : > { %3426 = dma.done.wait (%p2827_p0), %s2547_s12, 64  }
 0x766   : > { %3428 = vsyncadd (%p2827_p0), %s2547_s12, 4294967232  ;;  %p14_p1 = scmp.ge.s32.totalorder %s3498_s21, 4   ;;  %s4804_s15 = smov %s3435_s16 }
 0x767   : > { %s4805_s16 = smov %s3439_s17  ;;  %s4806_s17 = smov %s3509_s24 }
 0x768   : > { %s4807_s18 = smov %s3498_s21  ;;  %16 = sbr.rel (!%p14_p1) target bundleno = 3 (0x3), region = 82 }
 0x76d   :  { %2552 = vsyncpa [#allocation3], 1 }
 0x76e   :  { %2554 = vsyncpa [#allocation3 + $0x1], 1 }

</bundles_post_ra>
